<compile_context>
chip_gen: v6e
topology: v6e:2x2x1
jax: 0.10.0
libtpu: 0.0.40
codegen_flags: <defaults>
</compile_context>

<pallas_src>
import jax
import jax.numpy as jnp
import numpy as np
from jax import lax
from jax.experimental import pallas as pl
from jax.experimental.pallas import tpu as pltpu


# --------------------------------------------------------------------------------------
# Fused whole-network kernel.  One grid step processes Bt images.
#
# Layouts (all f32):
#   x_ref   : (24, Bt, 140)    rows = (oh, b) [b minor, Bt % 8 == 0],
#                              lanes = kh*28 + w  (conv1 kh taps folded into K)
#   w1b_ref : (140, 512)       conv1 band weights, row = kh*28 + (ow+kw)
#                              out lanes: [0:192]  = even-ow taps (wp*16 + c)
#                                         [256:448]= odd-ow  taps (wp*16 + c)
#   w2b_ref : (5, 256, 256)    conv2 band weights per kh (input rows = iw*16 + ci)
#                              out lanes: [0:128]  = even-ow taps (owp*32 + co)
#                                         [128:256]= odd-ow  taps   (compacted)
#   wf_ref  : (512, 128)       collapsed fc1@fc2@out, rows in the kernel's
#                              (h_p*128 + w_p*32 + co) flatten order; cols [0:10] valid
#   o_ref   : (Bt, 128)        logits padded to 128 lanes (dense store); wrapper
#                              slices [:, :10]
# --------------------------------------------------------------------------------------
def classifier_kernel(x_ref, w1b_ref, b1_ref, w2b_ref, b2_ref, wf_ref, bf_ref, o_ref):
    bt = x_ref.shape[1]

    # conv1 (5x5, valid): single banded matmul, kh folded into K=140.
    xk = x_ref[...].reshape(24 * bt, 140)
    acc1 = jnp.dot(xk, w1b_ref[...], preferred_element_type=jnp.float32)
    y1 = jnp.maximum(acc1 + b1_ref[...], 0.0)                     # bias + ReLU

    # maxpool1 (2x2/2): horizontal pairs are the two aligned 256-lane halves,
    # vertical pairs are adjacent (h, b) row blocks -> leading-dim reshape + max.
    h1h = jnp.maximum(y1[:, 0:256], y1[:, 256:512])               # (24*Bt, 256)
    h1p = h1h.reshape(12, 2, bt, 256)
    h1 = jnp.maximum(h1p[:, 0], h1p[:, 1])                        # (12, Bt, 256)

    # conv2 (5x5, valid) as 5 banded matmuls over kh: (8*Bt, 256) @ (256, 256).
    # Initialize the accumulator from the first tap (no zeros + add).
    acc2 = jnp.dot(h1[0:8].reshape(8 * bt, 256), w2b_ref[0],
                   preferred_element_type=jnp.float32)
    for kh in range(1, 5):
        xk2 = h1[kh:kh + 8].reshape(8 * bt, 256)
        acc2 = acc2 + jnp.dot(xk2, w2b_ref[kh], preferred_element_type=jnp.float32)
    y2 = jnp.maximum(acc2 + b2_ref[...], 0.0)                     # (8*Bt, 256)

    # maxpool2 (2x2/2): aligned 128-lane halves (compacted layout) + row-pair max.
    h2h = jnp.maximum(y2[:, 0:128], y2[:, 128:256])               # (8*Bt, 128)
    h2p = h2h.reshape(4, 2, bt, 128)
    h2 = jnp.maximum(h2p[:, 0], h2p[:, 1])                        # (4, Bt, 128)

    # Collapsed FC head (fc1 -> fc2 -> out folded into one weight): concatenate the
    # 4 pooled row slabs into 128-aligned lane windows and do one K=512 matmul.
    xfc = jnp.concatenate([h2[0], h2[1], h2[2], h2[3]], axis=-1)  # (Bt, 512)
    o_ref[...] = (jnp.dot(xfc, wf_ref[...], preferred_element_type=jnp.float32)
                  + bf_ref[...])


# --------------------------------------------------------------------------------------
# Parameters (same convention as the PyTorch module; fc weights stored (in, out)).
# --------------------------------------------------------------------------------------
def init_params(key):
    ks = jax.random.split(key, 10)

    def w(k, shape, scale=0.05):
        return (scale * jax.random.normal(k, shape)).astype(jnp.float32)

    return {
        "cnn1_w": w(ks[0], (5, 5, 1, 16)),    # HWIO
        "cnn1_b": w(ks[1], (1, 16)),
        "cnn2_w": w(ks[2], (5, 5, 16, 32)),
        "cnn2_b": w(ks[3], (1, 32)),
        "fc1_w": w(ks[4], (32 * 4 * 4, 10)),  # rows in PyTorch NCHW-flatten order
        "fc1_b": w(ks[5], (1, 10)),
        "fc2_w": w(ks[6], (10, 5)),
        "fc2_b": w(ks[7], (1, 5)),
        "out_w": w(ks[8], (5, 10)),
        "out_b": w(ks[9], (1, 10)),
    }


def pack_params(p):
    """One-time host-side repack of the weights into band / collapsed matrices."""
    w1 = np.asarray(p["cnn1_w"], np.float32)
    b1 = np.asarray(p["cnn1_b"], np.float32).reshape(16)
    w2 = np.asarray(p["cnn2_w"], np.float32)
    b2 = np.asarray(p["cnn2_b"], np.float32).reshape(32)
    fc1_w = np.asarray(p["fc1_w"], np.float32)
    fc1_b = np.asarray(p["fc1_b"], np.float32)
    fc2_w = np.asarray(p["fc2_w"], np.float32)
    fc2_b = np.asarray(p["fc2_b"], np.float32)
    out_w = np.asarray(p["out_w"], np.float32)
    out_b = np.asarray(p["out_b"], np.float32)

    # conv1 band, kh folded into rows: row = kh*28 + (ow+kw),
    # output column = (ow%2)*256 + (ow//2)*16 + c.
    w1b = np.zeros((140, 512), np.float32)
    b1p = np.zeros((1, 512), np.float32)
    for ow in range(24):
        base = (ow % 2) * 256 + (ow // 2) * 16
        b1p[0, base:base + 16] = b1
        for kh in range(5):
            for kw in range(5):
                w1b[kh * 28 + ow + kw, base:base + 16] = w1[kh, kw, 0, :]

    # conv2 band (compacted): input row = iw*16 + ci,
    # output column = (ow%2)*128 + (ow//2)*32 + co.
    w2b = np.zeros((5, 256, 256), np.float32)
    b2p = np.zeros((1, 256), np.float32)
    for ow in range(8):
        base = (ow % 2) * 128 + (ow // 2) * 32
        b2p[0, base:base + 32] = b2
        for kh in range(5):
            for kw in range(5):
                iw = ow + kw
                w2b[kh, iw * 16:(iw + 1) * 16, base:base + 32] = w2[kh, kw, :, :]

    # Collapse fc1 -> fc2 -> out (no nonlinearity between them; dropout = identity),
    # reorder rows from NCHW-flatten (c*16 + h*4 + w) to the kernel's
    # (h*128 + w*32 + c) layout, pad cols to 128 for a lane-dense output store.
    wf = fc1_w @ fc2_w @ out_w                              # (512, 10)
    bf = (fc1_b @ fc2_w + fc2_b) @ out_w + out_b            # (1, 10)
    wfp = wf.reshape(32, 4, 4, 10).transpose(1, 2, 0, 3).reshape(512, 10)
    wfk = np.zeros((512, 128), np.float32)
    wfk[:, :10] = wfp
    bfp = np.zeros((1, 128), np.float32)
    bfp[0, :10] = bf[0]

    return {k: jnp.asarray(v) for k, v in
            dict(w1b=w1b, b1p=b1p, w2b=w2b, b2p=b2p, wf=wfk, bfp=bfp).items()}


# --------------------------------------------------------------------------------------
# ClassifierMnist forward (eval mode, probe_mode=False)
# --------------------------------------------------------------------------------------
def classifier_mnist_forward(x_nchw, packed):
    B, C, H, W = x_nchw.shape
    assert (C, H, W) == (1, 28, 28), "ClassifierMnist expects 1x28x28 inputs"
    # Batch tile: as large as possible up to 128 (multiple of 8).  128 fits the
    # explicit 48 MiB VMEM budget on every generation (v7x has only 64 MiB total).
    bt = min(128, ((B + 7) // 8) * 8)
    bp = ((B + bt - 1) // bt) * bt
    x = x_nchw.reshape(B, 28, 28)
    if bp != B:
        x = jnp.pad(x, ((0, bp - B), (0, 0), (0, 0)))
    # Fold conv1's 5 kh taps into the contraction dim: lane index = kh*28 + w.
    x5 = jnp.concatenate([x[:, kh:kh + 24, :] for kh in range(5)], axis=-1)  # (Bp,24,140)
    xh = jnp.transpose(x5, (1, 0, 2))                                        # (24,Bp,140)

    # TODO(synk): SmallLayerConcept probe heads are computed-but-discarded when
    # probe_mode=False (the default), so they are omitted; dropout is identity in eval.
    out = pl.pallas_call(
        classifier_kernel,
        out_shape=jax.ShapeDtypeStruct((bp, 128), jnp.float32),
        grid=(bp // bt,),
        in_specs=[
            pl.BlockSpec((24, bt, 140), lambda i: (0, i, 0)),
            pl.BlockSpec((140, 512), lambda i: (0, 0)),
            pl.BlockSpec((1, 512), lambda i: (0, 0)),
            pl.BlockSpec((5, 256, 256), lambda i: (0, 0, 0)),
            pl.BlockSpec((1, 256), lambda i: (0, 0)),
            pl.BlockSpec((512, 128), lambda i: (0, 0)),
            pl.BlockSpec((1, 128), lambda i: (0, 0)),
        ],
        out_specs=pl.BlockSpec((bt, 128), lambda i: (i, 0)),
        compiler_params=pltpu.CompilerParams(
            dimension_semantics=("parallel",),
            vmem_limit_bytes=48 * 1024 * 1024,
        ),
    )(xh, packed["w1b"], packed["b1p"], packed["w2b"], packed["b2p"],
      packed["wf"], packed["bfp"])
    return out[:B, :10]


# Pure-JAX reference for numerical validation.
def reference_forward(x_nchw, p):
    x = jnp.transpose(x_nchw, (0, 2, 3, 1))

    def block(x, w, b):
        y = lax.conv_general_dilated(x, w, (1, 1), "VALID",
                                     dimension_numbers=("NHWC", "HWIO", "NHWC"))
        y = jnp.maximum(y + b.reshape(1, 1, 1, -1), 0.0)
        return lax.reduce_window(y, -jnp.inf, lax.max,
                                 (1, 2, 2, 1), (1, 2, 2, 1), "VALID")

    h = block(x, p["cnn1_w"], p["cnn1_b"])
    h = block(h, p["cnn2_w"], p["cnn2_b"])
    h = jnp.transpose(h, (0, 3, 1, 2)).reshape(h.shape[0], -1)    # NCHW flatten
    h = h @ p["fc1_w"] + p["fc1_b"]
    h = h @ p["fc2_w"] + p["fc2_b"]
    return h @ p["out_w"] + p["out_b"]


if __name__ == "__main__":
    key = jax.random.PRNGKey(0)
    kx, kp = jax.random.split(key)
    # MNIST-sized input is required: fc1 expects 32*4*4 features -> 28x28 spatial.
    x = jax.random.normal(kx, (2, 1, 28, 28), dtype=jnp.float32)  # NCHW like PyTorch
    params = init_params(kp)
    packed = pack_params(params)

    out = jax.block_until_ready(classifier_mnist_forward(x, packed))
    assert out.shape == (2, 10), out.shape

    ref = reference_forward(x, params)
    max_err = float(jnp.max(jnp.abs(out - ref)))
    assert jnp.allclose(out, ref, atol=2e-3, rtol=2e-3), max_err

    print("KERNEL_OK")
</pallas_src>

<mosaic_0001>
module attributes {stable_mosaic.version = 11 : i64} {
  func.func @classifier_kernel(%arg0: i32, %arg1: memref<24x8x140xf32, #tpu.memory_space<vmem>>, %arg2: memref<140x512xf32, #tpu.memory_space<vmem>>, %arg3: memref<1x512xf32, #tpu.memory_space<vmem>>, %arg4: memref<5x256x256xf32, #tpu.memory_space<vmem>>, %arg5: memref<1x256xf32, #tpu.memory_space<vmem>>, %arg6: memref<512x128xf32, #tpu.memory_space<vmem>>, %arg7: memref<1x128xf32, #tpu.memory_space<vmem>>, %arg8: memref<8x128xf32, #tpu.memory_space<vmem>>) attributes {dimension_semantics = [#tpu.dimension_semantics<parallel>], iteration_bounds = array<i64: 1>, scalar_prefetch = 0 : i64, scratch_operands = 0 : i64, tpu.core_type = #tpu.core_type<tc>, window_params = [{transform_indices = @transform_0, window_bounds = array<i64: 24, 8, 140>}, {pipeline_mode = #tpu.pipeline_mode<synchronous>, transform_indices = @transform_1, window_bounds = array<i64: 140, 512>}, {pipeline_mode = #tpu.pipeline_mode<synchronous>, transform_indices = @transform_2, window_bounds = array<i64: 1, 512>}, {pipeline_mode = #tpu.pipeline_mode<synchronous>, transform_indices = @transform_3, window_bounds = array<i64: 5, 256, 256>}, {pipeline_mode = #tpu.pipeline_mode<synchronous>, transform_indices = @transform_4, window_bounds = array<i64: 1, 256>}, {pipeline_mode = #tpu.pipeline_mode<synchronous>, transform_indices = @transform_5, window_bounds = array<i64: 512, 128>}, {pipeline_mode = #tpu.pipeline_mode<synchronous>, transform_indices = @transform_6, window_bounds = array<i64: 1, 128>}, {transform_indices = @transform_7, window_bounds = array<i64: 8, 128>}]} {
    %c0 = arith.constant 0 : index
    %c0_0 = arith.constant 0 : index
    %c0_1 = arith.constant 0 : index
    %0 = vector.load %arg1[%c0, %c0_0, %c0_1] : memref<24x8x140xf32, #tpu.memory_space<vmem>>, vector<24x8x140xf32>
    %1 = vector.shape_cast %0 : vector<24x8x140xf32> to vector<192x140xf32>
    %c0_2 = arith.constant 0 : index
    %c0_3 = arith.constant 0 : index
    %2 = vector.load %arg2[%c0_2, %c0_3] : memref<140x512xf32, #tpu.memory_space<vmem>>, vector<140x512xf32>
    %cst = arith.constant dense<0.000000e+00> : vector<192x512xf32>
    %3 = tpu.matmul %1, %2, %cst {dimension_numbers = #tpu.dot_dimension_numbers<[1], [0], [0], [1], [0, 0, 1, 1], [], []>} : vector<192x140xf32>, vector<140x512xf32>, vector<192x512xf32> -> vector<192x512xf32>
    %c0_4 = arith.constant 0 : index
    %c0_5 = arith.constant 0 : index
    %4 = vector.load %arg3[%c0_4, %c0_5] : memref<1x512xf32, #tpu.memory_space<vmem>>, vector<1x512xf32>
    %5 = vector.broadcast %4 : vector<1x512xf32> to vector<192x512xf32>
    %6 = arith.addf %3, %5 : vector<192x512xf32>
    %cst_6 = arith.constant 0.000000e+00 : f32
    %7 = vector.broadcast %cst_6 : f32 to vector<192x512xf32>
    %8 = arith.maximumf %6, %7 : vector<192x512xf32>
    %9 = vector.extract_strided_slice %8 {offsets = [0, 0], sizes = [192, 256], strides = [1, 1]} : vector<192x512xf32> to vector<192x256xf32>
    %10 = vector.extract_strided_slice %8 {offsets = [0, 256], sizes = [192, 256], strides = [1, 1]} : vector<192x512xf32> to vector<192x256xf32>
    %11 = arith.maximumf %9, %10 : vector<192x256xf32>
    %12 = vector.shape_cast %11 : vector<192x256xf32> to vector<12x2x8x256xf32>
    %13 = vector.extract_strided_slice %12 {offsets = [0, 0, 0, 0], sizes = [12, 1, 8, 256], strides = [1, 1, 1, 1]} : vector<12x2x8x256xf32> to vector<12x1x8x256xf32>
    %14 = vector.shape_cast %13 : vector<12x1x8x256xf32> to vector<12x8x256xf32>
    %15 = vector.extract_strided_slice %12 {offsets = [0, 1, 0, 0], sizes = [12, 1, 8, 256], strides = [1, 1, 1, 1]} : vector<12x2x8x256xf32> to vector<12x1x8x256xf32>
    %16 = vector.shape_cast %15 : vector<12x1x8x256xf32> to vector<12x8x256xf32>
    %17 = arith.maximumf %14, %16 : vector<12x8x256xf32>
    %18 = vector.extract_strided_slice %17 {offsets = [0, 0, 0], sizes = [8, 8, 256], strides = [1, 1, 1]} : vector<12x8x256xf32> to vector<8x8x256xf32>
    %19 = vector.shape_cast %18 : vector<8x8x256xf32> to vector<64x256xf32>
    %c0_7 = arith.constant 0 : index
    %c0_8 = arith.constant 0 : index
    %c0_9 = arith.constant 0 : index
    %20 = vector.load %arg4[%c0_7, %c0_8, %c0_9] : memref<5x256x256xf32, #tpu.memory_space<vmem>>, vector<1x256x256xf32>
    %21 = vector.shape_cast %20 : vector<1x256x256xf32> to vector<256x256xf32>
    %cst_10 = arith.constant dense<0.000000e+00> : vector<64x256xf32>
    %22 = tpu.matmul %19, %21, %cst_10 {dimension_numbers = #tpu.dot_dimension_numbers<[1], [0], [0], [1], [0, 0, 1, 1], [], []>} : vector<64x256xf32>, vector<256x256xf32>, vector<64x256xf32> -> vector<64x256xf32>
    %23 = vector.extract_strided_slice %17 {offsets = [1, 0, 0], sizes = [8, 8, 256], strides = [1, 1, 1]} : vector<12x8x256xf32> to vector<8x8x256xf32>
    %24 = vector.shape_cast %23 : vector<8x8x256xf32> to vector<64x256xf32>
    %c1 = arith.constant 1 : index
    %c0_11 = arith.constant 0 : index
    %c0_12 = arith.constant 0 : index
    %25 = vector.load %arg4[%c1, %c0_11, %c0_12] : memref<5x256x256xf32, #tpu.memory_space<vmem>>, vector<1x256x256xf32>
    %26 = vector.shape_cast %25 : vector<1x256x256xf32> to vector<256x256xf32>
    %cst_13 = arith.constant dense<0.000000e+00> : vector<64x256xf32>
    %27 = tpu.matmul %24, %26, %cst_13 {dimension_numbers = #tpu.dot_dimension_numbers<[1], [0], [0], [1], [0, 0, 1, 1], [], []>} : vector<64x256xf32>, vector<256x256xf32>, vector<64x256xf32> -> vector<64x256xf32>
    %28 = arith.addf %22, %27 : vector<64x256xf32>
    %29 = vector.extract_strided_slice %17 {offsets = [2, 0, 0], sizes = [8, 8, 256], strides = [1, 1, 1]} : vector<12x8x256xf32> to vector<8x8x256xf32>
    %30 = vector.shape_cast %29 : vector<8x8x256xf32> to vector<64x256xf32>
    %c2 = arith.constant 2 : index
    %c0_14 = arith.constant 0 : index
    %c0_15 = arith.constant 0 : index
    %31 = vector.load %arg4[%c2, %c0_14, %c0_15] : memref<5x256x256xf32, #tpu.memory_space<vmem>>, vector<1x256x256xf32>
    %32 = vector.shape_cast %31 : vector<1x256x256xf32> to vector<256x256xf32>
    %cst_16 = arith.constant dense<0.000000e+00> : vector<64x256xf32>
    %33 = tpu.matmul %30, %32, %cst_16 {dimension_numbers = #tpu.dot_dimension_numbers<[1], [0], [0], [1], [0, 0, 1, 1], [], []>} : vector<64x256xf32>, vector<256x256xf32>, vector<64x256xf32> -> vector<64x256xf32>
    %34 = arith.addf %28, %33 : vector<64x256xf32>
    %35 = vector.extract_strided_slice %17 {offsets = [3, 0, 0], sizes = [8, 8, 256], strides = [1, 1, 1]} : vector<12x8x256xf32> to vector<8x8x256xf32>
    %36 = vector.shape_cast %35 : vector<8x8x256xf32> to vector<64x256xf32>
    %c3 = arith.constant 3 : index
    %c0_17 = arith.constant 0 : index
    %c0_18 = arith.constant 0 : index
    %37 = vector.load %arg4[%c3, %c0_17, %c0_18] : memref<5x256x256xf32, #tpu.memory_space<vmem>>, vector<1x256x256xf32>
    %38 = vector.shape_cast %37 : vector<1x256x256xf32> to vector<256x256xf32>
    %cst_19 = arith.constant dense<0.000000e+00> : vector<64x256xf32>
    %39 = tpu.matmul %36, %38, %cst_19 {dimension_numbers = #tpu.dot_dimension_numbers<[1], [0], [0], [1], [0, 0, 1, 1], [], []>} : vector<64x256xf32>, vector<256x256xf32>, vector<64x256xf32> -> vector<64x256xf32>
    %40 = arith.addf %34, %39 : vector<64x256xf32>
    %41 = vector.extract_strided_slice %17 {offsets = [4, 0, 0], sizes = [8, 8, 256], strides = [1, 1, 1]} : vector<12x8x256xf32> to vector<8x8x256xf32>
    %42 = vector.shape_cast %41 : vector<8x8x256xf32> to vector<64x256xf32>
    %c4 = arith.constant 4 : index
    %c0_20 = arith.constant 0 : index
    %c0_21 = arith.constant 0 : index
    %43 = vector.load %arg4[%c4, %c0_20, %c0_21] : memref<5x256x256xf32, #tpu.memory_space<vmem>>, vector<1x256x256xf32>
    %44 = vector.shape_cast %43 : vector<1x256x256xf32> to vector<256x256xf32>
    %cst_22 = arith.constant dense<0.000000e+00> : vector<64x256xf32>
    %45 = tpu.matmul %42, %44, %cst_22 {dimension_numbers = #tpu.dot_dimension_numbers<[1], [0], [0], [1], [0, 0, 1, 1], [], []>} : vector<64x256xf32>, vector<256x256xf32>, vector<64x256xf32> -> vector<64x256xf32>
    %46 = arith.addf %40, %45 : vector<64x256xf32>
    %c0_23 = arith.constant 0 : index
    %c0_24 = arith.constant 0 : index
    %47 = vector.load %arg5[%c0_23, %c0_24] : memref<1x256xf32, #tpu.memory_space<vmem>>, vector<1x256xf32>
    %48 = vector.broadcast %47 : vector<1x256xf32> to vector<64x256xf32>
    %49 = arith.addf %46, %48 : vector<64x256xf32>
    %cst_25 = arith.constant 0.000000e+00 : f32
    %50 = vector.broadcast %cst_25 : f32 to vector<64x256xf32>
    %51 = arith.maximumf %49, %50 : vector<64x256xf32>
    %52 = vector.extract_strided_slice %51 {offsets = [0, 0], sizes = [64, 128], strides = [1, 1]} : vector<64x256xf32> to vector<64x128xf32>
    %53 = vector.extract_strided_slice %51 {offsets = [0, 128], sizes = [64, 128], strides = [1, 1]} : vector<64x256xf32> to vector<64x128xf32>
    %54 = arith.maximumf %52, %53 : vector<64x128xf32>
    %55 = vector.shape_cast %54 : vector<64x128xf32> to vector<4x2x8x128xf32>
    %56 = vector.extract_strided_slice %55 {offsets = [0, 0, 0, 0], sizes = [4, 1, 8, 128], strides = [1, 1, 1, 1]} : vector<4x2x8x128xf32> to vector<4x1x8x128xf32>
    %57 = vector.shape_cast %56 : vector<4x1x8x128xf32> to vector<4x8x128xf32>
    %58 = vector.extract_strided_slice %55 {offsets = [0, 1, 0, 0], sizes = [4, 1, 8, 128], strides = [1, 1, 1, 1]} : vector<4x2x8x128xf32> to vector<4x1x8x128xf32>
    %59 = vector.shape_cast %58 : vector<4x1x8x128xf32> to vector<4x8x128xf32>
    %60 = arith.maximumf %57, %59 : vector<4x8x128xf32>
    %61 = vector.extract_strided_slice %60 {offsets = [0, 0, 0], sizes = [1, 8, 128], strides = [1, 1, 1]} : vector<4x8x128xf32> to vector<1x8x128xf32>
    %62 = vector.shape_cast %61 : vector<1x8x128xf32> to vector<8x128xf32>
    %63 = vector.extract_strided_slice %60 {offsets = [1, 0, 0], sizes = [1, 8, 128], strides = [1, 1, 1]} : vector<4x8x128xf32> to vector<1x8x128xf32>
    %64 = vector.shape_cast %63 : vector<1x8x128xf32> to vector<8x128xf32>
    %65 = vector.extract_strided_slice %60 {offsets = [2, 0, 0], sizes = [1, 8, 128], strides = [1, 1, 1]} : vector<4x8x128xf32> to vector<1x8x128xf32>
    %66 = vector.shape_cast %65 : vector<1x8x128xf32> to vector<8x128xf32>
    %67 = vector.extract_strided_slice %60 {offsets = [3, 0, 0], sizes = [1, 8, 128], strides = [1, 1, 1]} : vector<4x8x128xf32> to vector<1x8x128xf32>
    %68 = vector.shape_cast %67 : vector<1x8x128xf32> to vector<8x128xf32>
    %69 = tpu.concatenate %62, %64, %66, %68 in 1 : vector<8x128xf32>, vector<8x128xf32>, vector<8x128xf32>, vector<8x128xf32> -> vector<8x512xf32>
    %c0_26 = arith.constant 0 : index
    %c0_27 = arith.constant 0 : index
    %70 = vector.load %arg6[%c0_26, %c0_27] : memref<512x128xf32, #tpu.memory_space<vmem>>, vector<512x128xf32>
    %cst_28 = arith.constant dense<0.000000e+00> : vector<8x128xf32>
    %71 = tpu.matmul %69, %70, %cst_28 {dimension_numbers = #tpu.dot_dimension_numbers<[1], [0], [0], [1], [0, 0, 1, 1], [], []>} : vector<8x512xf32>, vector<512x128xf32>, vector<8x128xf32> -> vector<8x128xf32>
    %c0_29 = arith.constant 0 : index
    %c0_30 = arith.constant 0 : index
    %72 = vector.load %arg7[%c0_29, %c0_30] : memref<1x128xf32, #tpu.memory_space<vmem>>, vector<1x128xf32>
    %73 = vector.broadcast %72 : vector<1x128xf32> to vector<8x128xf32>
    %74 = arith.addf %71, %73 : vector<8x128xf32>
    %c0_31 = arith.constant 0 : index
    %c0_32 = arith.constant 0 : index
    %75 = vector.load %arg8[%c0_31, %c0_32] : memref<8x128xf32, #tpu.memory_space<vmem>>, vector<8x128xf32>
    tpu.vector_store %arg8[%c0_31, %c0_32], %74 {strides = array<i32>} : memref<8x128xf32, #tpu.memory_space<vmem>>, vector<8x128xf32>,
    return
  }
  func.func @transform_0(%arg0: i32) -> (i32, i32, i32) {
    %c0_i32 = arith.constant 0 : i32
    %c0_i32_0 = arith.constant 0 : i32
    %c0_i32_1 = arith.constant 0 : i32
    return %c0_i32, %arg0, %c0_i32_0 : i32, i32, i32
  }
  func.func @transform_1(%arg0: i32) -> (i32, i32) {
    %c0_i32 = arith.constant 0 : i32
    %c0_i32_0 = arith.constant 0 : i32
    %c0_i32_1 = arith.constant 0 : i32
    return %c0_i32, %c0_i32_0 : i32, i32
  }
  func.func @transform_2(%arg0: i32) -> (i32, i32) {
    %c0_i32 = arith.constant 0 : i32
    %c0_i32_0 = arith.constant 0 : i32
    %c0_i32_1 = arith.constant 0 : i32
    return %c0_i32, %c0_i32_0 : i32, i32
  }
  func.func @transform_3(%arg0: i32) -> (i32, i32, i32) {
    %c0_i32 = arith.constant 0 : i32
    %c0_i32_0 = arith.constant 0 : i32
    %c0_i32_1 = arith.constant 0 : i32
    %c0_i32_2 = arith.constant 0 : i32
    return %c0_i32, %c0_i32_0, %c0_i32_1 : i32, i32, i32
  }
  func.func @transform_4(%arg0: i32) -> (i32, i32) {
    %c0_i32 = arith.constant 0 : i32
    %c0_i32_0 = arith.constant 0 : i32
    %c0_i32_1 = arith.constant 0 : i32
    return %c0_i32, %c0_i32_0 : i32, i32
  }
  func.func @transform_5(%arg0: i32) -> (i32, i32) {
    %c0_i32 = arith.constant 0 : i32
    %c0_i32_0 = arith.constant 0 : i32
    %c0_i32_1 = arith.constant 0 : i32
    return %c0_i32, %c0_i32_0 : i32, i32
  }
  func.func @transform_6(%arg0: i32) -> (i32, i32) {
    %c0_i32 = arith.constant 0 : i32
    %c0_i32_0 = arith.constant 0 : i32
    %c0_i32_1 = arith.constant 0 : i32
    return %c0_i32, %c0_i32_0 : i32, i32
  }
  func.func @transform_7(%arg0: i32) -> (i32, i32) {
    %c0_i32 = arith.constant 0 : i32
    %c0_i32_0 = arith.constant 0 : i32
    return %arg0, %c0_i32 : i32, i32
  }
}

</mosaic_0001>

<bundles_post_ra>
// kernel: tpu_custom_call.1
= control target key start
LH: loop header
LB: loop body
LE: loop exit
PB: predicated region body
PF: predicated region fallthrough
CT: control target
= control target key end

     0   :  { %12 = vsyncpa [#allocation3], 0  ;;  %s3013_s0 = inlined_call_operand.hbm [shape: f32[24,8,140], index: 0, kind: input, shape index: {}]   ;;  %s3014_s1 = inlined_call_operand.hbm [shape: f32[140,512], index: 1, kind: input, shape index: {}]   ;;  %s3015_s2 = inlined_call_operand.hbm [shape: f32[1,512], index: 2, kind: input, shape index: {}]   ;;  %s3016_s3 = inlined_call_operand.hbm [shape: f32[5,256,256], index: 3, kind: input, shape index: {}]   ;;  %s3017_s4 = inlined_call_operand.hbm [shape: f32[1,256], index: 4, kind: input, shape index: {}]   ;;  %s3018_s5 = inlined_call_operand.hbm [shape: f32[512,128], index: 5, kind: input, shape index: {}]   ;;  %s3019_s6 = inlined_call_operand.hbm [shape: f32[1,128], index: 6, kind: input, shape index: {}]   ;;  %s3020_s7 = inlined_call_operand.hbm [shape: f32[8,128], index: 7, kind: output, shape index: {}]  }
   0x1   :  { %13 = vsyncpa [#allocation6], 0 }
   0x2   :  { %14 = vsyncpa [#allocation9], 0 }
   0x3   :  { %15 = vsyncpa [#allocation12], 0 }
   0x4   :  { %16 = vsyncpa [#allocation4], 0  ;;  %s2460_s24 = smov [#allocation5]  }
   0x5   :  { %s34_s25 = sshll.u32 %s2460_s24, 4  ;;  %s35_s25 = int_to_ptr.vmem [resolvable:$true] %s34_s25 }
   0x6   :  { %s2298_s26 = scalar_lea.vmem %s35_s25, 9216  ;;  %p2303_p1 = scmp.lt.s32.totalorder %s35_s25, %s35_s25 }
   0x7   :  { %p2299_p0 = scmp.ne.s32.totalorder %s35_s25, %s2298_s26  ;;  %p2304_p2 = scmp.lt.s32.totalorder %s2298_s26, %s2298_s26 }
   0x9   :  { %p2305_p3 = por %p2304_p2, %p2303_p1 }
   0xb   :  { %p2306_p4 = pnand %p2305_p3, %p2299_p0 }
   0xd   :  { %2309 = shalt.err (!%p2306_p4)
}
   0xe   :  { %s2461_s27 = smov 512   ;;  %s2462_s28 = smov 32  }
   0xf   :  { %40 = dma.hbm_to_vmem [thread:$0]  %s3014_s1, 9216, %s35_s25, [#allocation6], %s2461_s27, %s2461_s27, %s2462_s28  }
  0x10   :  { %s2463_s8 = smov [#allocation8]   ;;  %s2464_s10 = smov [#allocation11]  }
  0x11   :  { %s56_s9 = sshll.u32 %s2463_s8, 4  ;;  %s78_s11 = sshll.u32 %s2464_s10, 4  ;;  %s57_s9 = int_to_ptr.vmem [resolvable:$true] %s56_s9  ;;  %s79_s11 = int_to_ptr.vmem [resolvable:$true] %s78_s11 }
  0x12   :  { %s2318_s12 = scalar_lea.vmem %s57_s9, 40960  ;;  %p2323_p6 = scmp.lt.s32.totalorder %s57_s9, %s57_s9 }
  0x13   :  { %p2319_p5 = scmp.ne.s32.totalorder %s57_s9, %s2318_s12  ;;  %p2324_p7 = scmp.lt.s32.totalorder %s2318_s12, %s2318_s12 }
  0x15   :  { %p2325_p8 = por %p2324_p7, %p2323_p6 }
  0x17   :  { %p2326_p9 = pnand %p2325_p8, %p2319_p5 }
  0x19   :  { %2329 = shalt.err (!%p2326_p9)
}
  0x1a   :  { %s2465_s13 = smov 256   ;;  %s2466_s14 = smov 16  }
  0x1b   :  { %62 = dma.hbm_to_vmem [thread:$0]  %s3016_s3, 40960, %s57_s9, [#allocation9], %s2465_s13, %s2465_s13, %s2466_s14  }
  0x1c   :  { %s2338_s1 = scalar_lea.vmem %s79_s11, 8192  ;;  %p2343_p11 = scmp.lt.s32.totalorder %s79_s11, %s79_s11 }
  0x1d   :  { %p2339_p10 = scmp.ne.s32.totalorder %s79_s11, %s2338_s1  ;;  %p2344_p12 = scmp.lt.s32.totalorder %s2338_s1, %s2338_s1 }
  0x1f   :  { %p2345_p13 = por %p2344_p12, %p2343_p11 }
  0x21   :  { %p2346_p0 = pnand %p2345_p13, %p2339_p10 }
  0x23   :  { %2349 = shalt.err (!%p2346_p0)
}
  0x24   :  { %s2467_s17 = smov 128   ;;  %s2468_s18 = smov 8  }
  0x25   :  { %84 = dma.hbm_to_vmem [thread:$0]  %s3018_s5, 8192, %s79_s11, [#allocation12], %s2467_s17, %s2467_s17, %s2468_s18  }
  0x26   :  { %s2469_s21 = smov [#allocation2]   ;;  %s2470_s23 = smov [#allocation7]  }
  0x27   :  { %s22_s22 = sshll.u32 %s2469_s21, 4  ;;  %s47_s24 = sshll.u32 %s2470_s23, 4  ;;  %s23_s22 = int_to_ptr.vmem [resolvable:$true] %s22_s22  ;;  %s48_s24 = int_to_ptr.vmem [resolvable:$true] %s47_s24 }
  0x28   :  { %s2358_s3 = scalar_lea.vmem %s23_s22, 6144  ;;  %p2363_p2 = scmp.lt.s32.totalorder %s23_s22, %s23_s22 }
  0x29   :  { %p2359_p1 = scmp.ne.s32.totalorder %s23_s22, %s2358_s3  ;;  %p2364_p3 = scmp.lt.s32.totalorder %s2358_s3, %s2358_s3 }
  0x2b   :  { %p2365_p4 = por %p2364_p3, %p2363_p2 }
  0x2d   :  { %p2366_p5 = pnand %p2365_p4, %p2359_p1 }
  0x2f   :  { %2369 = shalt.err (!%p2366_p5)
}
  0x30   :  { %28 = dma.hbm_to_vmem [thread:$0]  %s3013_s0, 6144, %s23_s22, [#allocation3], %s2465_s13, %s2465_s13, %s2466_s14  }
  0x31   :  { %s2378_s27 = scalar_lea.vmem %s48_s24, 64  ;;  %p2383_p7 = scmp.lt.s32.totalorder %s48_s24, %s48_s24 }
  0x32   :  { %p2379_p6 = scmp.ne.s32.totalorder %s48_s24, %s2378_s27  ;;  %p2384_p8 = scmp.lt.s32.totalorder %s2378_s27, %s2378_s27 }
  0x34   :  { %p2385_p9 = por %p2384_p8, %p2383_p7 }
  0x36   :  { %p2386_p10 = pnand %p2385_p9, %p2379_p6 }
  0x38   :  { %2389 = shalt.err (!%p2386_p10)
}
  0x39   :  { %50 = dma.hbm_to_vmem [thread:$0]  %s3015_s2, 64, %s48_s24, [#allocation6]  }
  0x3a   :  { %s2471_s29 = smov [#allocation10]   ;;  %s2472_s8 = smov [#allocation13]  }
  0x3b   :  { %s69_s30 = sshll.u32 %s2471_s29, 4  ;;  %s91_s9 = sshll.u32 %s2472_s8, 4  ;;  %s70_s30 = int_to_ptr.vmem [resolvable:$true] %s69_s30  ;;  %s92_s9 = int_to_ptr.vmem [resolvable:$true] %s91_s9 }
  0x3c   :  { %s2398_s10 = scalar_lea.vmem %s70_s30, 32  ;;  %p2403_p12 = scmp.lt.s32.totalorder %s70_s30, %s70_s30 }
  0x3d   :  { %p2399_p11 = scmp.ne.s32.totalorder %s70_s30, %s2398_s10  ;;  %p2404_p13 = scmp.lt.s32.totalorder %s2398_s10, %s2398_s10 }
  0x3f   :  { %p2405_p0 = por %p2404_p13, %p2403_p12 }
  0x41   :  { %p2406_p1 = pnand %p2405_p0, %p2399_p11 }
  0x43   :  { %2409 = shalt.err (!%p2406_p1)
}
  0x44   :  { %72 = dma.hbm_to_vmem [thread:$0]  %s3017_s4, 32, %s70_s30, [#allocation9]  }
  0x45   :  { %s2418_s12 = scalar_lea.vmem %s92_s9, 16  ;;  %s2422_s2 = scalar_lea.vmem %s92_s9, 32 }
  0x46   :  { %p2419_p2 = scmp.ne.s32.totalorder %s92_s9, %s2418_s12  ;;  %p2423_p3 = scmp.lt.s32.totalorder %s92_s9, %s92_s9 }
  0x47   :  { %p2424_p4 = scmp.lt.s32.totalorder %s2422_s2, %s2418_s12 }
  0x49   :  { %p2425_p5 = por %p2424_p4, %p2423_p3 }
  0x4b   :  { %p2426_p6 = pnand %p2425_p5, %p2419_p2 }
  0x4d   :  { %2429 = shalt.err (!%p2426_p6)
}
  0x4e   :  { %94 = dma.hbm_to_vmem [thread:$0]  %s3019_s6, 16, %s92_s9, [#allocation12]  }
  0x4f   :  { %2450 = dma.done.wait [#allocation3], 6144  }
  0x50   :  { %2451 = vsyncadd [#allocation3], 4294961152 }
  0x51   :  { %2452 = dma.done.wait [#allocation6], 9280  }
  0x52   :  { %2453 = vsyncadd [#allocation6], 4294958016 }
  0x53   :  { %2454 = dma.done.wait [#allocation9], 40992  }
  0x54   :  { %2455 = vsyncadd [#allocation9], 4294926304 }
  0x55   :  { %2456 = dma.done.wait [#allocation12], 8208  }
  0x56   :  { %2457 = vsyncadd [#allocation12], 4294959088  ;;  %v225_v0 = vld [vmem:[#allocation5 + $0x1e8] sm:$0xff]  ;;  %v227_v1 = vld [vmem:[#allocation5 + $0x1f8] sm:$0xff]  ;;  %vm331_vm0 = vcmask 1043456   ;;  %vm258_vm1 = vcmask 97280  }
  0x57   :  { %v224_v2 = vld [vmem:[#allocation5 + $0x1e0] sm:$0xff]  ;;  %344 = vmatprep.subr.mxu0 %v225_v0  ;;  %553 = vmatprep.subr.mxu1 %v227_v1  ;;  %v226_v3 = vld [vmem:[#allocation5 + $0x1f0] sm:$0xff]  ;;  %v221_v4 = vld [vmem:[#allocation5 + $0x1c8] sm:$0xff]  ;;  %s2473_s4 = smov [#allocation14]  }
  0x58   :  { %v223_v5 = vld [vmem:[#allocation5 + $0x1d8] sm:$0xff]  ;;  %345 = vmatpush1.msra.mxu0 %v224_v2  ;;  %554 = vmatpush1.msra.mxu1 %v226_v3  ;;  %v220_v6 = vld [vmem:[#allocation5 + $0x1c0] sm:$0xff]  ;;  %v222_v7 = vld [vmem:[#allocation5 + $0x1d0] sm:$0xff]  ;;  %s2141_s6 = sshll.u32 %s2473_s4, 4  ;;  %s2142_s6 = int_to_ptr.vmem [resolvable:$true] %s2141_s6 }
  0x59   :  { %v217_v8 = vld [vmem:[#allocation5 + $0x1a8] sm:$0xff]  ;;  %346 = vmatprep.subr.mxu0 %v221_v4  ;;  %555 = vmatprep.subr.mxu1 %v223_v5  ;;  %v219_v9 = vld [vmem:[#allocation5 + $0x1b8] sm:$0xff]  ;;  %v216_v10 = vld [vmem:[#allocation5 + $0x1a0] sm:$0xff]  ;;  %s2430_s15 = scalar_lea.vmem %s2142_s6, 128  ;;  %p2435_p8 = scmp.lt.s32.totalorder %s2142_s6, %s2142_s6 }
  0x5a   :  { %v218_v11 = vld [vmem:[#allocation5 + $0x1b0] sm:$0xff]  ;;  %347 = vmatpush1.msra.mxu0 %v220_v6  ;;  %556 = vmatpush1.msra.mxu1 %v222_v7  ;;  %v213_v12 = vld [vmem:[#allocation5 + $0x188] sm:$0xff]  ;;  %v215_v13 = vld [vmem:[#allocation5 + $0x198] sm:$0xff]  ;;  %p2431_p7 = scmp.ne.s32.totalorder %s2142_s6, %s2430_s15  ;;  %p2436_p9 = scmp.lt.s32.totalorder %s2430_s15, %s2430_s15 }
  0x5b   :  { %348 = vmatprep.subr.mxu0 %v217_v8  ;;  %557 = vmatprep.subr.mxu1 %v219_v9  ;;  %v212_v14 = vld [vmem:[#allocation5 + $0x180] sm:$0xff]  ;;  %v214_v15 = vld [vmem:[#allocation5 + $0x190] sm:$0xff]  ;;  %v209_v16 = vld [vmem:[#allocation5 + $0x168] sm:$0xff] }
  0x5c   :  { %349 = vmatpush1.msra.mxu0 %v216_v10  ;;  %558 = vmatpush1.msra.mxu1 %v218_v11  ;;  %v211_v17 = vld [vmem:[#allocation5 + $0x178] sm:$0xff]  ;;  %v208_v18 = vld [vmem:[#allocation5 + $0x160] sm:$0xff]  ;;  %v210_v19 = vld [vmem:[#allocation5 + $0x170] sm:$0xff]  ;;  %p2437_p10 = por %p2436_p9, %p2435_p8 }
  0x5d   :  { %350 = vmatprep.subr.mxu0 %v213_v12  ;;  %559 = vmatprep.subr.mxu1 %v215_v13  ;;  %v205_v20 = vld [vmem:[#allocation5 + $0x148] sm:$0xff]  ;;  %v207_v21 = vld [vmem:[#allocation5 + $0x158] sm:$0xff]  ;;  %v204_v22 = vld [vmem:[#allocation5 + $0x140] sm:$0xff] }
  0x5e   :  { %351 = vmatpush1.msra.mxu0 %v212_v14  ;;  %560 = vmatpush1.msra.mxu1 %v214_v15  ;;  %v206_v23 = vld [vmem:[#allocation5 + $0x150] sm:$0xff]  ;;  %v201_v24 = vld [vmem:[#allocation5 + $0x128] sm:$0xff]  ;;  %v203_v25 = vld [vmem:[#allocation5 + $0x138] sm:$0xff]  ;;  %p2438_p11 = pnand %p2437_p10, %p2431_p7 }
  0x5f   :  { %352 = vmatprep.subr.mxu0 %v209_v16  ;;  %561 = vmatprep.subr.mxu1 %v211_v17  ;;  %v200_v26 = vld [vmem:[#allocation5 + $0x120] sm:$0xff]  ;;  %v202_v27 = vld [vmem:[#allocation5 + $0x130] sm:$0xff]  ;;  %v197_v28 = vld [vmem:[#allocation5 + $0x108] sm:$0xff] }
  0x60   :  { %353 = vmatpush1.msra.mxu0 %v208_v18  ;;  %562 = vmatpush1.msra.mxu1 %v210_v19  ;;  %v199_v29 = vld [vmem:[#allocation5 + $0x118] sm:$0xff]  ;;  %v196_v30 = vld [vmem:[#allocation5 + $0x100] sm:$0xff]  ;;  %v198_v31 = vld [vmem:[#allocation5 + $0x110] sm:$0xff] }
  0x61   :  { %354 = vmatprep.subr.mxu0 %v205_v20  ;;  %563 = vmatprep.subr.mxu1 %v207_v21  ;;  %v193_v32 = vld [vmem:[#allocation5 + $0xe8] sm:$0xff]  ;;  %v195_v33 = vld [vmem:[#allocation5 + $0xf8] sm:$0xff]  ;;  %v192_v34 = vld [vmem:[#allocation5 + $0xe0] sm:$0xff] }
  0x62   :  { %355 = vmatpush1.msra.mxu0 %v204_v22  ;;  %564 = vmatpush1.msra.mxu1 %v206_v23  ;;  %v194_v35 = vld [vmem:[#allocation5 + $0xf0] sm:$0xff]  ;;  %v189_v36 = vld [vmem:[#allocation5 + $0xc8] sm:$0xff]  ;;  %v191_v37 = vld [vmem:[#allocation5 + $0xd8] sm:$0xff] }
  0x63   :  { %356 = vmatprep.subr.mxu0 %v201_v24  ;;  %565 = vmatprep.subr.mxu1 %v203_v25  ;;  %v188_v38 = vld [vmem:[#allocation5 + $0xc0] sm:$0xff]  ;;  %v190_v39 = vld [vmem:[#allocation5 + $0xd0] sm:$0xff]  ;;  %v185_v40 = vld [vmem:[#allocation5 + $0xa8] sm:$0xff] }
  0x64   :  { %357 = vmatpush1.msra.mxu0 %v200_v26  ;;  %566 = vmatpush1.msra.mxu1 %v202_v27  ;;  %v187_v41 = vld [vmem:[#allocation5 + $0xb8] sm:$0xff]  ;;  %v184_v42 = vld [vmem:[#allocation5 + $0xa0] sm:$0xff]  ;;  %v186_v43 = vld [vmem:[#allocation5 + $0xb0] sm:$0xff] }
  0x65   :  { %358 = vmatprep.subr.mxu0 %v197_v28  ;;  %567 = vmatprep.subr.mxu1 %v199_v29  ;;  %v181_v44 = vld [vmem:[#allocation5 + $0x88] sm:$0xff]  ;;  %v183_v45 = vld [vmem:[#allocation5 + $0x98] sm:$0xff]  ;;  %v180_v46 = vld [vmem:[#allocation5 + $0x80] sm:$0xff] }
  0x66   :  { %359 = vmatpush1.msra.mxu0 %v196_v30  ;;  %568 = vmatpush1.msra.mxu1 %v198_v31  ;;  %v182_v47 = vld [vmem:[#allocation5 + $0x90] sm:$0xff]  ;;  %v177_v48 = vld [vmem:[#allocation5 + $0x68] sm:$0xff]  ;;  %v179_v49 = vld [vmem:[#allocation5 + $0x78] sm:$0xff] }
  0x67   :  { %360 = vmatprep.subr.mxu0 %v193_v32  ;;  %569 = vmatprep.subr.mxu1 %v195_v33  ;;  %v176_v50 = vld [vmem:[#allocation5 + $0x60] sm:$0xff]  ;;  %v178_v51 = vld [vmem:[#allocation5 + $0x70] sm:$0xff]  ;;  %v173_v52 = vld [vmem:[#allocation5 + $0x48] sm:$0xff] }
  0x68   :  { %361 = vmatpush1.msra.mxu0 %v192_v34  ;;  %570 = vmatpush1.msra.mxu1 %v194_v35  ;;  %v175_v53 = vld [vmem:[#allocation5 + $0x58] sm:$0xff]  ;;  %v172_v54 = vld [vmem:[#allocation5 + $0x40] sm:$0xff]  ;;  %v174_v55 = vld [vmem:[#allocation5 + $0x50] sm:$0xff] }
  0x69   :  { %362 = vmatprep.subr.mxu0 %v189_v36  ;;  %571 = vmatprep.subr.mxu1 %v191_v37  ;;  %v169_v56 = vld [vmem:[#allocation5 + $0x28] sm:$0xff]  ;;  %v171_v57 = vld [vmem:[#allocation5 + $0x38] sm:$0xff]  ;;  %v168_v58 = vld [vmem:[#allocation5 + $0x20] sm:$0xff] }
  0x6a   :  { %363 = vmatpush1.msra.mxu0 %v188_v38  ;;  %572 = vmatpush1.msra.mxu1 %v190_v39  ;;  %v170_v59 = vld [vmem:[#allocation5 + $0x30] sm:$0xff]  ;;  %v165_v60 = vld [vmem:[#allocation5 + $0x8] sm:$0xff]  ;;  %v167_v61 = vld [vmem:[#allocation5 + $0x18] sm:$0xff] }
  0x6b   :  { %364 = vmatprep.subr.mxu0 %v185_v40  ;;  %573 = vmatprep.subr.mxu1 %v187_v41  ;;  %v164_v62 = vld [vmem:[#allocation5] sm:$0xff]  ;;  %v166_v63 = vld [vmem:[#allocation5 + $0x10] sm:$0xff]  ;;  %v233_v0 = vld [vmem:[#allocation5 + $0x228] sm:$0xf] }
  0x6c   :  { %365 = vmatpush1.msra.mxu0 %v184_v42  ;;  %574 = vmatpush1.msra.mxu1 %v186_v43  ;;  %v235_v1 = vld [vmem:[#allocation5 + $0x238] sm:$0xf]  ;;  %v232_v2 = vld [vmem:[#allocation5 + $0x220] sm:$0xf]  ;;  %v234_v3 = vld [vmem:[#allocation5 + $0x230] sm:$0xf] }
  0x6d   :  { %366 = vmatprep.subr.mxu0 %v181_v44  ;;  %575 = vmatprep.subr.mxu1 %v183_v45  ;;  %v229_v4 = vld [vmem:[#allocation5 + $0x208] sm:$0xff]  ;;  %v231_v5 = vld [vmem:[#allocation5 + $0x218] sm:$0xff]  ;;  %v228_v6 = vld [vmem:[#allocation5 + $0x200] sm:$0xff] }
  0x6e   :  { %367 = vmatpush1.msra.mxu0 %v180_v46  ;;  %576 = vmatpush1.msra.mxu1 %v182_v47  ;;  %v117_v7 = vld [vmem:[#allocation2 + $0x8] sm:$0xff]  ;;  %v230_v8 = vld [vmem:[#allocation5 + $0x210] sm:$0xff]  ;;  %v116_v9 = vld [vmem:[#allocation2] sm:$0xff] }
  0x6f   :  { %368 = vmatprep.subr.mxu0 %v177_v48  ;;  %577 = vmatprep.subr.mxu1 %v179_v49  ;;  %v119_v10 = vld [vmem:[#allocation2 + $0x18] sm:$0xff]  ;;  %v118_v12 = vld [vmem:[#allocation2 + $0x10] sm:$0xff]  ;;  %v121_v14 = vld [vmem:[#allocation2 + $0x28] sm:$0xff] }
  0x70   :  { %369 = vmatpush1.msra.mxu0 %v176_v50  ;;  %578 = vmatpush1.msra.mxu1 %v178_v51  ;;  %v1026_v11 = vld [vmem:[#allocation8 + $0x2f8] sm:$0xff]  ;;  %v1025_v13 = vld [vmem:[#allocation8 + $0x2f0] sm:$0xff]  ;;  %v1024_v15 = vld [vmem:[#allocation8 + $0x2e8] sm:$0xff] }
  0x71   :  { %370 = vmatprep.subr.mxu0 %v173_v52  ;;  %579 = vmatprep.subr.mxu1 %v175_v53  ;;  %v1023_v16 = vld [vmem:[#allocation8 + $0x2e0] sm:$0xff]  ;;  %v123_v18 = vld [vmem:[#allocation2 + $0x38] sm:$0xff]  ;;  %v959_v23 = vld [vmem:[#allocation8 + $0xe8] sm:$0xff] }
  0x72   :  { %371 = vmatpush1.msra.mxu0 %v172_v54  ;;  %580 = vmatpush1.msra.mxu1 %v174_v55  ;;  %v120_v17 = vld [vmem:[#allocation2 + $0x20] sm:$0xff]  ;;  %v960_v21 = vld [vmem:[#allocation8 + $0xf0] sm:$0xff]  ;;  %v125_v25 = vld [vmem:[#allocation2 + $0x48] sm:$0xff] }
  0x73   :  { %372 = vmatprep.subr.mxu0 %v169_v56  ;;  %581 = vmatprep.subr.mxu1 %v171_v57  ;;  %v961_v19 = vld [vmem:[#allocation8 + $0xf8] sm:$0xff]  ;;  %v1021_v22 = vld [vmem:[#allocation8 + $0x2d0] sm:$0xff]  ;;  %v1020_v26 = vld [vmem:[#allocation8 + $0x2c8] sm:$0xff] }
  0x74   :  { %373 = vmatpush1.msra.mxu0 %v168_v58  ;;  %582 = vmatpush1.msra.mxu1 %v170_v59  ;;  %v1022_v20 = vld [vmem:[#allocation8 + $0x2d8] sm:$0xff]  ;;  %v122_v24 = vld [vmem:[#allocation2 + $0x30] sm:$0xff]  ;;  %v958_v27 = vld [vmem:[#allocation8 + $0xe0] sm:$0xff] }
  0x75   :  { %374 = vmatprep.subr.mxu0 %v165_v60  ;;  %583 = vmatprep.subr.mxu1 %v167_v61  ;;  %v1019_v28 = vld [vmem:[#allocation8 + $0x2c0] sm:$0xff]  ;;  %v957_v29 = vld [vmem:[#allocation8 + $0xd8] sm:$0xff]  ;;  %v956_v33 = vld [vmem:[#allocation8 + $0xd0] sm:$0xff] }
  0x76   :  { %375 = vmatpush1.msra.mxu0 %v164_v62  ;;  %584 = vmatpush1.msra.mxu1 %v166_v63  ;;  %v124_v30 = vld [vmem:[#allocation2 + $0x40] sm:$0xff]  ;;  %v127_v31 = vld [vmem:[#allocation2 + $0x58] sm:$0xff]  ;;  %v955_v35 = vld [vmem:[#allocation8 + $0xc8] sm:$0xff] }
  0x77   :  { %2153 = vmatprep.subr.msk.mxu0 %vm331_vm0, %v233_v0  ;;  %2179 = vmatprep.subr.msk.mxu1 %vm331_vm0, %v235_v1  ;;  %v1018_v32 = vld [vmem:[#allocation8 + $0x2b8] sm:$0xff]  ;;  %v1017_v34 = vld [vmem:[#allocation8 + $0x2b0] sm:$0xff]  ;;  %v129_v37 = vld [vmem:[#allocation2 + $0x68] sm:$0xff] }
  0x78   :  { %2154 = vmatpush2.msk.msra.mxu0 %vm331_vm0, %v232_v2  ;;  %2180 = vmatpush2.msk.msra.mxu1 %vm331_vm0, %v234_v3  ;;  %v126_v36 = vld [vmem:[#allocation2 + $0x50] sm:$0xff]  ;;  %v954_v39 = vld [vmem:[#allocation8 + $0xc0] sm:$0xff]  ;;  %v953_v41 = vld [vmem:[#allocation8 + $0xb8] sm:$0xff] }
  0x79   :  { %406 = vmatprep.subr.mxu0 %v229_v4  ;;  %615 = vmatprep.subr.mxu1 %v231_v5  ;;  %v1016_v38 = vld [vmem:[#allocation8 + $0x2a8] sm:$0xff]  ;;  %v1015_v40 = vld [vmem:[#allocation8 + $0x2a0] sm:$0xff]  ;;  %v131_v43 = vld [vmem:[#allocation2 + $0x78] sm:$0xff] }
  0x7a   :  { %407 = vmatpush2.msra.mxu0 %v228_v6  ;;  %2155 = vmatprep.mubr.msk.f32.mxu0 %vm258_vm1, %v117_v7  ;;  %v128_v42 = vld [vmem:[#allocation2 + $0x60] sm:$0xff]  ;;  %v952_v45 = vld [vmem:[#allocation8 + $0xb0] sm:$0xff]  ;;  %v951_v47 = vld [vmem:[#allocation8 + $0xa8] sm:$0xff] }
  0x7b   :  { %616 = vmatpush2.msra.mxu1 %v230_v8  ;;  %2181 = vmatprep.mubr.msk.f32.mxu1 %vm258_vm1, %v117_v7  ;;  %v1014_v44 = vld [vmem:[#allocation8 + $0x298] sm:$0xff]  ;;  %v1013_v46 = vld [vmem:[#allocation8 + $0x290] sm:$0xff]  ;;  %v133_v49 = vld [vmem:[#allocation2 + $0x88] sm:$0xff] }
  0x7c   :  { %409 = vmatmul.mubr.f32.vlgmr.msra.gmra.mxu0 %v116_v9  ;;  %618 = vmatmul.mubr.f32.vlgmr.msra.gmra.mxu1 %v116_v9  ;;  %v130_v48 = vld [vmem:[#allocation2 + $0x70] sm:$0xff]  ;;  %v950_v51 = vld [vmem:[#allocation8 + $0xa0] sm:$0xff]  ;;  %v949_v53 = vld [vmem:[#allocation8 + $0x98] sm:$0xff] }
  0x7d   :  { %2156 = vmatprep.mubr.msk.f32.mxu0 %vm258_vm1, %v119_v10  ;;  %2182 = vmatprep.mubr.msk.f32.mxu1 %vm258_vm1, %v119_v10  ;;  %v1012_v50 = vld [vmem:[#allocation8 + $0x288] sm:$0xff]  ;;  %v1011_v52 = vld [vmem:[#allocation8 + $0x280] sm:$0xff]  ;;  %v135_v55 = vld [vmem:[#allocation2 + $0x98] sm:$0xff] }
  0x7e   :  { %1059 = vmatprep.subr.mxu0 %v1026_v11  ;;  %1172 = vmatprep.subr.mxu1 %v961_v19  ;;  %v132_v54 = vld [vmem:[#allocation2 + $0x80] sm:$0xff]  ;;  %v948_v57 = vld [vmem:[#allocation8 + $0x90] sm:$0xff]  ;;  %v947_v59 = vld [vmem:[#allocation8 + $0x88] sm:$0xff] }
  0x7f   :  { %1060 = vmatpush1.msra.mxu0 %v1025_v13  ;;  %1173 = vmatpush1.msra.mxu1 %v960_v21  ;;  %v1010_v56 = vld [vmem:[#allocation8 + $0x278] sm:$0xff]  ;;  %v1009_v58 = vld [vmem:[#allocation8 + $0x270] sm:$0xff]  ;;  %v137_v61 = vld [vmem:[#allocation2 + $0xa8] sm:$0xff] }
  0x80   :  { %415 = vmatmul.mubr.f32.gmra.mxu0 %v118_v12  ;;  %624 = vmatmul.mubr.f32.gmra.mxu1 %v118_v12  ;;  %v134_v60 = vld [vmem:[#allocation2 + $0x90] sm:$0xff]  ;;  %v946_v63 = vld [vmem:[#allocation8 + $0x80] sm:$0xff]  ;;  %v945_v1 = vld [vmem:[#allocation8 + $0x78] sm:$0xff] }
  0x81   :  { %2157 = vmatprep.mubr.msk.f32.mxu0 %vm258_vm1, %v121_v14  ;;  %2183 = vmatprep.mubr.msk.f32.mxu1 %vm258_vm1, %v121_v14  ;;  %v1008_v62 = vld [vmem:[#allocation8 + $0x268] sm:$0xff]  ;;  %v1007_v0 = vld [vmem:[#allocation8 + $0x260] sm:$0xff]  ;;  %v139_v3 = vld [vmem:[#allocation2 + $0xb8] sm:$0xff] }
  0x82   :  { %1061 = vmatprep.subr.mxu0 %v1024_v15  ;;  %1174 = vmatprep.subr.mxu1 %v959_v23  ;;  %v136_v2 = vld [vmem:[#allocation2 + $0xa0] sm:$0xff]  ;;  %v944_v5 = vld [vmem:[#allocation8 + $0x70] sm:$0xff]  ;;  %v943_v7 = vld [vmem:[#allocation8 + $0x68] sm:$0xff] }
  0x83   :  { %1062 = vmatpush1.msra.mxu0 %v1023_v16  ;;  %1175 = vmatpush1.msra.mxu1 %v958_v27  ;;  %v1006_v4 = vld [vmem:[#allocation8 + $0x258] sm:$0xff]  ;;  %v1005_v6 = vld [vmem:[#allocation8 + $0x250] sm:$0xff]  ;;  %v141_v9 = vld [vmem:[#allocation2 + $0xc8] sm:$0xff] }
  0x84   :  { %421 = vmatmul.mubr.f32.gmra.mxu0 %v120_v17  ;;  %630 = vmatmul.mubr.f32.gmra.mxu1 %v120_v17  ;;  %v138_v8 = vld [vmem:[#allocation2 + $0xb0] sm:$0xff]  ;;  %v942_v11 = vld [vmem:[#allocation8 + $0x60] sm:$0xff]  ;;  %v941_v13 = vld [vmem:[#allocation8 + $0x58] sm:$0xff] }
  0x85   :  { %2158 = vmatprep.mubr.msk.f32.mxu0 %vm258_vm1, %v123_v18  ;;  %2184 = vmatprep.mubr.msk.f32.mxu1 %vm258_vm1, %v123_v18  ;;  %v1004_v10 = vld [vmem:[#allocation8 + $0x248] sm:$0xff]  ;;  %v1003_v12 = vld [vmem:[#allocation8 + $0x240] sm:$0xff]  ;;  %v143_v15 = vld [vmem:[#allocation2 + $0xd8] sm:$0xff] }
  0x86   :  { %1063 = vmatprep.subr.mxu0 %v1022_v20  ;;  %1176 = vmatprep.subr.mxu1 %v957_v29  ;;  %v140_v14 = vld [vmem:[#allocation2 + $0xc0] sm:$0xff]  ;;  %v940_v17 = vld [vmem:[#allocation8 + $0x50] sm:$0xff]  ;;  %v939_v19 = vld [vmem:[#allocation8 + $0x48] sm:$0xff] }
  0x87   :  { %1064 = vmatpush1.msra.mxu0 %v1021_v22  ;;  %1177 = vmatpush1.msra.mxu1 %v956_v33  ;;  %v1002_v16 = vld [vmem:[#allocation8 + $0x238] sm:$0xff]  ;;  %v1001_v18 = vld [vmem:[#allocation8 + $0x230] sm:$0xff]  ;;  %v145_v21 = vld [vmem:[#allocation2 + $0xe8] sm:$0xff] }
  0x88   :  { %427 = vmatmul.mubr.f32.gmra.mxu0 %v122_v24  ;;  %636 = vmatmul.mubr.f32.gmra.mxu1 %v122_v24  ;;  %v142_v20 = vld [vmem:[#allocation2 + $0xd0] sm:$0xff]  ;;  %v938_v23 = vld [vmem:[#allocation8 + $0x40] sm:$0xff]  ;;  %v147_v27 = vld [vmem:[#allocation2 + $0xf8] sm:$0xff] }
  0x89   :  { %2159 = vmatprep.mubr.msk.f32.mxu0 %vm258_vm1, %v125_v25  ;;  %2185 = vmatprep.mubr.msk.f32.mxu1 %vm258_vm1, %v125_v25  ;;  %v1000_v22 = vld [vmem:[#allocation8 + $0x228] sm:$0xff]  ;;  %v999_v24 = vld [vmem:[#allocation8 + $0x220] sm:$0xff]  ;;  %v937_v25 = vld [vmem:[#allocation8 + $0x38] sm:$0xff] }
  0x8a   :  { %1065 = vmatprep.subr.mxu0 %v1020_v26  ;;  %1178 = vmatprep.subr.mxu1 %v955_v35  ;;  %v144_v26 = vld [vmem:[#allocation2 + $0xe0] sm:$0xff]  ;;  %v936_v29 = vld [vmem:[#allocation8 + $0x30] sm:$0xff]  ;;  %v149_v33 = vld [vmem:[#allocation2 + $0x108] sm:$0xff] }
  0x8b   :  { %1066 = vmatpush1.msra.mxu0 %v1019_v28  ;;  %1179 = vmatpush1.msra.mxu1 %v954_v39  ;;  %v998_v28 = vld [vmem:[#allocation8 + $0x218] sm:$0xff]  ;;  %v934_v35 = vld [vmem:[#allocation8 + $0x20] sm:$0xff] }
  0x8c   :  { %433 = vmatmul.mubr.f32.gmra.mxu0 %v124_v30  ;;  %642 = vmatmul.mubr.f32.gmra.mxu1 %v124_v30  ;;  %v997_v30 = vld [vmem:[#allocation8 + $0x210] sm:$0xff] }
  0x8d   :  { %2160 = vmatprep.mubr.msk.f32.mxu0 %vm258_vm1, %v127_v31  ;;  %2186 = vmatprep.mubr.msk.f32.mxu1 %vm258_vm1, %v127_v31  ;;  %v935_v31 = vld [vmem:[#allocation8 + $0x28] sm:$0xff]  ;;  %v151_v39 = vld [vmem:[#allocation2 + $0x118] sm:$0xff] }
  0x8e   :  { %1067 = vmatprep.subr.mxu0 %v1018_v32  ;;  %1180 = vmatprep.subr.mxu1 %v953_v41  ;;  %v146_v32 = vld [vmem:[#allocation2 + $0xf0] sm:$0xff] }
  0x8f   :  { %1068 = vmatpush1.msra.mxu0 %v1017_v34  ;;  %1181 = vmatpush1.msra.mxu1 %v952_v45  ;;  %v996_v34 = vld [vmem:[#allocation8 + $0x208] sm:$0xff]  ;;  %v932_v41 = vld [vmem:[#allocation8 + $0x10] sm:$0xff] }
  0x90   :  { %439 = vmatmul.mubr.f32.gmra.mxu0 %v126_v36  ;;  %648 = vmatmul.mubr.f32.gmra.mxu1 %v126_v36  ;;  %v995_v36 = vld [vmem:[#allocation8 + $0x200] sm:$0xff] }
  0x91   :  { %2161 = vmatprep.mubr.msk.f32.mxu0 %vm258_vm1, %v129_v37  ;;  %2187 = vmatprep.mubr.msk.f32.mxu1 %vm258_vm1, %v129_v37  ;;  %v933_v37 = vld [vmem:[#allocation8 + $0x18] sm:$0xff]  ;;  %v153_v45 = vld [vmem:[#allocation2 + $0x128] sm:$0xff] }
  0x92   :  { %1069 = vmatprep.subr.mxu0 %v1016_v38  ;;  %1182 = vmatprep.subr.mxu1 %v951_v47  ;;  %v148_v38 = vld [vmem:[#allocation2 + $0x100] sm:$0xff] }
  0x93   :  { %1070 = vmatpush1.msra.mxu0 %v1015_v40  ;;  %1183 = vmatpush1.msra.mxu1 %v950_v51  ;;  %v1058_v40 = vld [vmem:[#allocation8 + $0x3f8] sm:$0xff]  ;;  %v930_v47 = vld [vmem:[#allocation8] sm:$0xff] }
  0x94   :  { %445 = vmatmul.mubr.f32.gmra.mxu0 %v128_v42  ;;  %654 = vmatmul.mubr.f32.gmra.mxu1 %v128_v42  ;;  %v1057_v42 = vld [vmem:[#allocation8 + $0x3f0] sm:$0xff] }
  0x95   :  { %2162 = vmatprep.mubr.msk.f32.mxu0 %vm258_vm1, %v131_v43  ;;  %2188 = vmatprep.mubr.msk.f32.mxu1 %vm258_vm1, %v131_v43  ;;  %v931_v43 = vld [vmem:[#allocation8 + $0x8] sm:$0xff]  ;;  %v155_v51 = vld [vmem:[#allocation2 + $0x138] sm:$0xff] }
  0x96   :  { %1071 = vmatprep.subr.mxu0 %v1014_v44  ;;  %1184 = vmatprep.subr.mxu1 %v949_v53  ;;  %v150_v44 = vld [vmem:[#allocation2 + $0x110] sm:$0xff] }
  0x97   :  { %1072 = vmatpush1.msra.mxu0 %v1013_v46  ;;  %1185 = vmatpush1.msra.mxu1 %v948_v57  ;;  %v1056_v46 = vld [vmem:[#allocation8 + $0x3e8] sm:$0xff]  ;;  %v992_v53 = vld [vmem:[#allocation8 + $0x1f0] sm:$0xff] }
  0x98   :  { %451 = vmatmul.mubr.f32.gmra.mxu0 %v130_v48  ;;  %660 = vmatmul.mubr.f32.gmra.mxu1 %v130_v48  ;;  %v1055_v48 = vld [vmem:[#allocation8 + $0x3e0] sm:$0xff] }
  0x99   :  { %2163 = vmatprep.mubr.msk.f32.mxu0 %vm258_vm1, %v133_v49  ;;  %2189 = vmatprep.mubr.msk.f32.mxu1 %vm258_vm1, %v133_v49  ;;  %v993_v49 = vld [vmem:[#allocation8 + $0x1f8] sm:$0xff]  ;;  %v157_v57 = vld [vmem:[#allocation2 + $0x148] sm:$0xff] }
  0x9a   :  { %1073 = vmatprep.subr.mxu0 %v1012_v50  ;;  %1186 = vmatprep.subr.mxu1 %v947_v59  ;;  %v152_v50 = vld [vmem:[#allocation2 + $0x120] sm:$0xff] }
  0x9b   :  { %1074 = vmatpush1.msra.mxu0 %v1011_v52  ;;  %1187 = vmatpush1.msra.mxu1 %v946_v63  ;;  %v1054_v52 = vld [vmem:[#allocation8 + $0x3d8] sm:$0xff]  ;;  %v990_v59 = vld [vmem:[#allocation8 + $0x1e0] sm:$0xff] }
  0x9c   :  { %457 = vmatmul.mubr.f32.gmra.mxu0 %v132_v54  ;;  %666 = vmatmul.mubr.f32.gmra.mxu1 %v132_v54  ;;  %v1053_v54 = vld [vmem:[#allocation8 + $0x3d0] sm:$0xff] }
  0x9d   :  { %2164 = vmatprep.mubr.msk.f32.mxu0 %vm258_vm1, %v135_v55  ;;  %2190 = vmatprep.mubr.msk.f32.mxu1 %vm258_vm1, %v135_v55  ;;  %v991_v55 = vld [vmem:[#allocation8 + $0x1e8] sm:$0xff]  ;;  %v159_v63 = vld [vmem:[#allocation2 + $0x158] sm:$0xff] }
  0x9e   :  { %1075 = vmatprep.subr.mxu0 %v1010_v56  ;;  %1188 = vmatprep.subr.mxu1 %v945_v1  ;;  %v154_v56 = vld [vmem:[#allocation2 + $0x130] sm:$0xff] }
  0x9f   :  { %1076 = vmatpush1.msra.mxu0 %v1009_v58  ;;  %1189 = vmatpush1.msra.mxu1 %v944_v5  ;;  %v1052_v58 = vld [vmem:[#allocation8 + $0x3c8] sm:$0xff]  ;;  %v988_v1 = vld [vmem:[#allocation8 + $0x1d0] sm:$0xff] }
  0xa0   :  { %463 = vmatmul.mubr.f32.gmra.mxu0 %v134_v60  ;;  %672 = vmatmul.mubr.f32.gmra.mxu1 %v134_v60  ;;  %v1051_v60 = vld [vmem:[#allocation8 + $0x3c0] sm:$0xff] }
  0xa1   :  { %2165 = vmatprep.mubr.msk.f32.mxu0 %vm258_vm1, %v137_v61  ;;  %2191 = vmatprep.mubr.msk.f32.mxu1 %vm258_vm1, %v137_v61  ;;  %v989_v61 = vld [vmem:[#allocation8 + $0x1d8] sm:$0xff]  ;;  %v161_v5 = vld [vmem:[#allocation2 + $0x168] sm:$0xff] }
  0xa2   :  { %1077 = vmatprep.subr.mxu0 %v1008_v62  ;;  %1190 = vmatprep.subr.mxu1 %v943_v7  ;;  %v156_v62 = vld [vmem:[#allocation2 + $0x140] sm:$0xff] }
  0xa3   :  { %1078 = vmatpush1.msra.mxu0 %v1007_v0  ;;  %1191 = vmatpush1.msra.mxu1 %v942_v11  ;;  %v1050_v0 = vld [vmem:[#allocation8 + $0x3b8] sm:$0xff]  ;;  %v986_v7 = vld [vmem:[#allocation8 + $0x1c0] sm:$0xff] }
  0xa4   :  { %469 = vmatmul.mubr.f32.gmra.mxu0 %v136_v2  ;;  %678 = vmatmul.mubr.f32.gmra.mxu1 %v136_v2  ;;  %v1049_v2 = vld [vmem:[#allocation8 + $0x3b0] sm:$0xff] }
  0xa5   :  { %2166 = vmatprep.mubr.msk.f32.mxu0 %vm258_vm1, %v139_v3  ;;  %2192 = vmatprep.mubr.msk.f32.mxu1 %vm258_vm1, %v139_v3  ;;  %v987_v3 = vld [vmem:[#allocation8 + $0x1c8] sm:$0xff]  ;;  %v163_v11 = vld [vmem:[#allocation2 + $0x178] sm:$0xff] }
  0xa6   :  { %1079 = vmatprep.subr.mxu0 %v1006_v4  ;;  %1192 = vmatprep.subr.mxu1 %v941_v13  ;;  %v158_v4 = vld [vmem:[#allocation2 + $0x150] sm:$0xff]  ;;  %v1046_v13 = vld [vmem:[#allocation8 + $0x398] sm:$0xff] }
  0xa7   :  { %1080 = vmatpush1.msra.mxu0 %v1005_v6  ;;  %1193 = vmatpush1.msra.mxu1 %v940_v17  ;;  %v1048_v6 = vld [vmem:[#allocation8 + $0x3a8] sm:$0xff]  ;;  %v982_v17 = vld [vmem:[#allocation8 + $0x1a0] sm:$0xff] }
  0xa8   :  { %475 = vmatmul.mubr.f32.gmra.mxu0 %v138_v8  ;;  %684 = vmatmul.mubr.f32.gmra.mxu1 %v138_v8  ;;  %v1047_v8 = vld [vmem:[#allocation8 + $0x3a0] sm:$0xff] }
  0xa9   :  { %2167 = vmatprep.mubr.msk.f32.mxu0 %vm258_vm1, %v141_v9  ;;  %2193 = vmatprep.mubr.msk.f32.mxu1 %vm258_vm1, %v141_v9  ;;  %v985_v9 = vld [vmem:[#allocation8 + $0x1b8] sm:$0xff] }
  0xaa   :  { %1081 = vmatprep.subr.mxu0 %v1004_v10  ;;  %1194 = vmatprep.subr.mxu1 %v939_v19  ;;  %v160_v10 = vld [vmem:[#allocation2 + $0x160] sm:$0xff] }
  0xab   :  { %1082 = vmatpush1.msra.mxu0 %v1003_v12  ;;  %1195 = vmatpush1.msra.mxu1 %v938_v23  ;;  %v984_v12 = vld [vmem:[#allocation8 + $0x1b0] sm:$0xff]  ;;  %v981_v19 = vld [vmem:[#allocation8 + $0x198] sm:$0xff]  ;;  %v979_v23 = vld [vmem:[#allocation8 + $0x188] sm:$0xff] }
  0xac   :  { %481 = vmatmul.mubr.f32.gmra.mxu0 %v140_v14  ;;  %690 = vmatmul.mubr.f32.gmra.mxu1 %v140_v14  ;;  %v983_v14 = vld [vmem:[#allocation8 + $0x1a8] sm:$0xff] }
  0xad   :  { %2168 = vmatprep.mubr.msk.f32.mxu0 %vm258_vm1, %v143_v15  ;;  %2194 = vmatprep.mubr.msk.f32.mxu1 %vm258_vm1, %v143_v15  ;;  %v1045_v15 = vld [vmem:[#allocation8 + $0x390] sm:$0xff] }
  0xae   :  { %1083 = vmatprep.subr.mxu0 %v1002_v16  ;;  %1196 = vmatprep.subr.mxu1 %v937_v25  ;;  %v162_v16 = vld [vmem:[#allocation2 + $0x170] sm:$0xff]  ;;  %v978_v25 = vld [vmem:[#allocation8 + $0x180] sm:$0xff] }
  0xaf   :  { %1084 = vmatpush1.msra.mxu0 %v1001_v18  ;;  %1197 = vmatpush1.msra.mxu1 %v936_v29  ;;  %v1044_v18 = vld [vmem:[#allocation8 + $0x388] sm:$0xff]  ;;  %v976_v29 = vld [vmem:[#allocation8 + $0x170] sm:$0xff] }
  0xb0   :  { %487 = vmatmul.mubr.f32.gmra.mxu0 %v142_v20  ;;  %696 = vmatmul.mubr.f32.gmra.mxu1 %v142_v20  ;;  %v1043_v20 = vld [vmem:[#allocation8 + $0x380] sm:$0xff] }
  0xb1   :  { %2169 = vmatprep.mubr.msk.f32.mxu0 %vm258_vm1, %v145_v21  ;;  %2195 = vmatprep.mubr.msk.f32.mxu1 %vm258_vm1, %v145_v21  ;;  %v980_v21 = vld [vmem:[#allocation8 + $0x190] sm:$0xff] }
  0xb2   :  { %1085 = vmatprep.subr.mxu0 %v1000_v22  ;;  %1198 = vmatprep.subr.mxu1 %v935_v31  ;;  %v1042_v22 = vld [vmem:[#allocation8 + $0x378] sm:$0xff]  ;;  %v975_v31 = vld [vmem:[#allocation8 + $0x168] sm:$0xff] }
  0xb3   :  { %1086 = vmatpush1.msra.mxu0 %v999_v24  ;;  %1199 = vmatpush1.msra.mxu1 %v934_v35  ;;  %v1041_v24 = vld [vmem:[#allocation8 + $0x370] sm:$0xff]  ;;  %v973_v35 = vld [vmem:[#allocation8 + $0x158] sm:$0xff] }
  0xb4   :  { %493 = vmatmul.mubr.f32.gmra.mxu0 %v144_v26  ;;  %702 = vmatmul.mubr.f32.gmra.mxu1 %v144_v26  ;;  %v1040_v26 = vld [vmem:[#allocation8 + $0x368] sm:$0xff] }
  0xb5   :  { %2170 = vmatprep.mubr.msk.f32.mxu0 %vm258_vm1, %v147_v27  ;;  %2196 = vmatprep.mubr.msk.f32.mxu1 %vm258_vm1, %v147_v27  ;;  %v977_v27 = vld [vmem:[#allocation8 + $0x178] sm:$0xff] }
  0xb6   :  { %1087 = vmatprep.subr.mxu0 %v998_v28  ;;  %1200 = vmatprep.subr.mxu1 %v933_v37  ;;  %v1039_v28 = vld [vmem:[#allocation8 + $0x360] sm:$0xff]  ;;  %v972_v37 = vld [vmem:[#allocation8 + $0x150] sm:$0xff] }
  0xb7   :  { %1088 = vmatpush1.msra.mxu0 %v997_v30  ;;  %1201 = vmatpush1.msra.mxu1 %v932_v41  ;;  %v1038_v30 = vld [vmem:[#allocation8 + $0x358] sm:$0xff]  ;;  %v970_v41 = vld [vmem:[#allocation8 + $0x140] sm:$0xff] }
  0xb8   :  { %499 = vmatmul.mubr.f32.gmra.mxu0 %v146_v32  ;;  %708 = vmatmul.mubr.f32.gmra.mxu1 %v146_v32  ;;  %v1037_v32 = vld [vmem:[#allocation8 + $0x350] sm:$0xff] }
  0xb9   :  { %2171 = vmatprep.mubr.msk.f32.mxu0 %vm258_vm1, %v149_v33  ;;  %2197 = vmatprep.mubr.msk.f32.mxu1 %vm258_vm1, %v149_v33  ;;  %v974_v33 = vld [vmem:[#allocation8 + $0x160] sm:$0xff] }
  0xba   :  { %1089 = vmatprep.subr.mxu0 %v996_v34  ;;  %1202 = vmatprep.subr.mxu1 %v931_v43  ;;  %v1036_v34 = vld [vmem:[#allocation8 + $0x348] sm:$0xff]  ;;  %v969_v43 = vld [vmem:[#allocation8 + $0x138] sm:$0xff] }
  0xbb   :  { %1090 = vmatpush1.msra.mxu0 %v995_v36  ;;  %1203 = vmatpush1.msra.mxu1 %v930_v47  ;;  %v1035_v36 = vld [vmem:[#allocation8 + $0x340] sm:$0xff]  ;;  %v967_v47 = vld [vmem:[#allocation8 + $0x128] sm:$0xff] }
  0xbc   :  { %505 = vmatmul.mubr.f32.gmra.mxu0 %v148_v38  ;;  %714 = vmatmul.mubr.f32.gmra.mxu1 %v148_v38  ;;  %v1034_v38 = vld [vmem:[#allocation8 + $0x338] sm:$0xff] }
  0xbd   :  { %2172 = vmatprep.mubr.msk.f32.mxu0 %vm258_vm1, %v151_v39  ;;  %2198 = vmatprep.mubr.msk.f32.mxu1 %vm258_vm1, %v151_v39  ;;  %v971_v39 = vld [vmem:[#allocation8 + $0x148] sm:$0xff] }
  0xbe   :  { %1091 = vmatprep.subr.mxu0 %v1058_v40  ;;  %1204 = vmatprep.subr.mxu1 %v993_v49  ;;  %v1033_v40 = vld [vmem:[#allocation8 + $0x330] sm:$0xff]  ;;  %v966_v49 = vld [vmem:[#allocation8 + $0x120] sm:$0xff] }
  0xbf   :  { %1092 = vmatpush2.msra.mxu0 %v1057_v42  ;;  %1205 = vmatpush2.msra.mxu1 %v992_v53  ;;  %v1032_v42 = vld [vmem:[#allocation8 + $0x328] sm:$0xff]  ;;  %v964_v53 = vld [vmem:[#allocation8 + $0x110] sm:$0xff] }
  0xc0   :  { %511 = vmatmul.mubr.f32.gmra.mxu0 %v150_v44  ;;  %720 = vmatmul.mubr.f32.gmra.mxu1 %v150_v44  ;;  %v1031_v44 = vld [vmem:[#allocation8 + $0x320] sm:$0xff] }
  0xc1   :  { %2173 = vmatprep.mubr.msk.f32.mxu0 %vm258_vm1, %v153_v45  ;;  %2199 = vmatprep.mubr.msk.f32.mxu1 %vm258_vm1, %v153_v45  ;;  %v968_v45 = vld [vmem:[#allocation8 + $0x130] sm:$0xff] }
  0xc2   :  { %1093 = vmatprep.subr.mxu0 %v1056_v46  ;;  %1206 = vmatprep.subr.mxu1 %v991_v55  ;;  %v1030_v46 = vld [vmem:[#allocation8 + $0x318] sm:$0xff]  ;;  %v963_v55 = vld [vmem:[#allocation8 + $0x108] sm:$0xff] }
  0xc3   :  { %1094 = vmatpush2.msra.mxu0 %v1055_v48  ;;  %1207 = vmatpush2.msra.mxu1 %v990_v59  ;;  %v1029_v48 = vld [vmem:[#allocation8 + $0x310] sm:$0xff] }
  0xc4   :  { %517 = vmatmul.mubr.f32.gmra.mxu0 %v152_v50  ;;  %726 = vmatmul.mubr.f32.gmra.mxu1 %v152_v50  ;;  %v1028_v50 = vld [vmem:[#allocation8 + $0x308] sm:$0xff] }
  0xc5   :  { %2174 = vmatprep.mubr.msk.f32.mxu0 %vm258_vm1, %v155_v51  ;;  %2200 = vmatprep.mubr.msk.f32.mxu1 %vm258_vm1, %v155_v51  ;;  %v965_v51 = vld [vmem:[#allocation8 + $0x118] sm:$0xff] }
  0xc6   :  { %1095 = vmatprep.subr.mxu0 %v1054_v52  ;;  %1208 = vmatprep.subr.mxu1 %v989_v61  ;;  %v1027_v52 = vld [vmem:[#allocation8 + $0x300] sm:$0xff]  ;;  %v236_v61 = vld [vmem:[#allocation7] sm:$0xf] }
  0xc7   :  { %1096 = vmatpush2.msra.mxu0 %v1053_v54  ;;  %1209 = vmatpush2.msra.mxu1 %v988_v1  ;;  %v1317_v54 = vld [vmem:[#allocation8 + $0x4f8] sm:$0xff] }
  0xc8   :  { %523 = vmatmul.mubr.f32.gmra.mxu0 %v154_v56  ;;  %732 = vmatmul.mubr.f32.gmra.mxu1 %v154_v56  ;;  %v962_v56 = vld [vmem:[#allocation8 + $0x100] sm:$0xff] }
  0xc9   :  { %2175 = vmatprep.mubr.msk.f32.mxu0 %vm258_vm1, %v157_v57  ;;  %2201 = vmatprep.mubr.msk.f32.mxu1 %vm258_vm1, %v157_v57  ;;  %v1511_v57 = vld [vmem:[#allocation8 + $0x6f8] sm:$0xff] }
  0xca   :  { %1097 = vmatprep.subr.mxu0 %v1052_v58  ;;  %1210 = vmatprep.subr.mxu1 %v987_v3  ;;  %v238_v58 = vlaneseq }
  0xcb   :  { %1098 = vmatpush2.msra.mxu0 %v1051_v60  ;;  %1211 = vmatpush2.msra.mxu1 %v986_v7 }
  0xcc   :  { %529 = vmatmul.mubr.f32.gmra.mxu0 %v156_v62  ;;  %738 = vmatmul.mubr.f32.gmra.mxu1 %v156_v62  ;;  %v2587_v59 = vshrl.u32 %v238_v58, 7 }
  0xcd   :  { %2176 = vmatprep.mubr.msk.f32.mxu0 %vm258_vm1, %v159_v63  ;;  %2202 = vmatprep.mubr.msk.f32.mxu1 %vm258_vm1, %v159_v63 }
  0xce   :  { %1099 = vmatprep.subr.mxu0 %v1050_v0  ;;  %1212 = vmatprep.subr.mxu1 %v985_v9  ;;  %v3022_v60 = vsub.s32 0, %v2587_v59  ;;  %v248_v62 = vsub.s32 2, %v2587_v59  ;;  %v3021_v63 = vsub.s32 1, %v2587_v59  ;;  %v252_v0 = vsub.s32 3, %v2587_v59 }
  0xcf   :  { %1100 = vmatpush2.msra.mxu0 %v1049_v2  ;;  %1213 = vmatpush2.msra.mxu1 %v984_v12 }
  0xd0   :  { %535 = vmatmul.mubr.f32.gmra.mxu0 %v158_v4  ;;  %744 = vmatmul.mubr.f32.gmra.mxu1 %v158_v4  ;;  %v2595_v1 = vrot.slane %v236_v61, %v3022_v60  ;;  %v2597_v2 = vrot.slane %v236_v61, %v248_v62  ;;  %v1509_v62 = vld [vmem:[#allocation8 + $0x6e8] sm:$0xff] }
  0xd1   :  { %2177 = vmatprep.mubr.msk.f32.mxu0 %vm258_vm1, %v161_v5  ;;  %2203 = vmatprep.mubr.msk.f32.mxu1 %vm258_vm1, %v161_v5  ;;  %v2601_v5 = vrot.slane %v236_v61, %v3021_v63 }
  0xd2   :  { %1101 = vmatprep.subr.mxu0 %v1048_v6  ;;  %1214 = vmatprep.subr.mxu1 %v983_v14  ;;  %v2603_v6 = vrot.slane %v236_v61, %v252_v0 }
  0xd3   :  { %1102 = vmatpush2.msra.mxu0 %v1047_v8  ;;  %1215 = vmatpush2.msra.mxu1 %v982_v17 }
  0xd4   :  { %541 = vmatmul.mubr.f32.gmra.mxu0 %v160_v10  ;;  %750 = vmatmul.mubr.f32.gmra.mxu1 %v160_v10 }
  0xd5   :  { %2178 = vmatprep.mubr.msk.f32.mxu0 %vm258_vm1, %v163_v11  ;;  %2204 = vmatprep.mubr.msk.f32.mxu1 %vm258_vm1, %v163_v11 }
  0xd6   :  { %1103 = vmatprep.subr.mxu0 %v1046_v13  ;;  %1216 = vmatprep.subr.mxu1 %v981_v19 }
  0xd7   :  { %1104 = vmatpush2.msra.mxu0 %v1045_v15  ;;  %1217 = vmatpush2.msra.mxu1 %v980_v21 }
  0xd8   :  { %547 = vmatmul.mubr.f32.gmra.mxu0 %v162_v16  ;;  %756 = vmatmul.mubr.f32.gmra.mxu1 %v162_v16 }
  0xd9   :  { %1105 = vmatprep.subr.mxu0 %v1044_v18  ;;  %1218 = vmatprep.subr.mxu1 %v979_v23 }
  0xda   :  { %1106 = vmatpush2.msra.mxu0 %v1043_v20  ;;  %1219 = vmatpush2.msra.mxu1 %v978_v25 }
  0xdb   :  { %1107 = vmatprep.subr.mxu0 %v1042_v22  ;;  %1220 = vmatprep.subr.mxu1 %v977_v27 }
  0xdc   :  { %1108 = vmatpush2.msra.mxu0 %v1041_v24  ;;  %1221 = vmatpush2.msra.mxu1 %v976_v29 }
  0xdd   :  { %1109 = vmatprep.subr.mxu0 %v1040_v26  ;;  %1222 = vmatprep.subr.mxu1 %v975_v31 }
  0xde   :  { %1110 = vmatpush2.msra.mxu0 %v1039_v28  ;;  %1223 = vmatpush2.msra.mxu1 %v974_v33 }
  0xdf   :  { %1111 = vmatprep.subr.mxu0 %v1038_v30  ;;  %1224 = vmatprep.subr.mxu1 %v973_v35 }
  0xe0   :  { %1112 = vmatpush2.msra.mxu0 %v1037_v32  ;;  %1225 = vmatpush2.msra.mxu1 %v972_v37 }
  0xe1   :  { %1113 = vmatprep.subr.mxu0 %v1036_v34  ;;  %1226 = vmatprep.subr.mxu1 %v971_v39 }
  0xe2   :  { %1114 = vmatpush2.msra.mxu0 %v1035_v36  ;;  %1227 = vmatpush2.msra.mxu1 %v970_v41 }
  0xe3   :  { %1115 = vmatprep.subr.mxu0 %v1034_v38  ;;  %1228 = vmatprep.subr.mxu1 %v969_v43 }
  0xe4   :  { %1116 = vmatpush2.msra.mxu0 %v1033_v40  ;;  %1229 = vmatpush2.msra.mxu1 %v968_v45 }
  0xe5   :  { %1117 = vmatprep.subr.mxu0 %v1032_v42  ;;  %1230 = vmatprep.subr.mxu1 %v967_v47 }
  0xe6   :  { %1118 = vmatpush2.msra.mxu0 %v1031_v44  ;;  %1231 = vmatpush2.msra.mxu1 %v966_v49 }
  0xe7   :  { %1119 = vmatprep.subr.mxu0 %v1030_v46  ;;  %1232 = vmatprep.subr.mxu1 %v965_v51 }
  0xe8   :  { %1120 = vmatpush2.msra.mxu0 %v1029_v48  ;;  %1233 = vmatpush2.msra.mxu1 %v964_v53 }
  0xe9   :  { %1121 = vmatprep.subr.mxu0 %v1028_v50  ;;  %1234 = vmatprep.subr.mxu1 %v963_v55  ;;  %v1510_v55 = vld [vmem:[#allocation8 + $0x6f0] sm:$0xff] }
  0xea   :  { %1122 = vmatpush2.msra.mxu0 %v1027_v52  ;;  %1235 = vmatpush2.msra.mxu1 %v962_v56 }
  0xeb   :  { %1350 = vmatprep.subr.mxu0 %v1317_v54  ;;  %1544 = vmatprep.subr.mxu1 %v1511_v57 }
 0x13c   :  { %v410_v3 = vpop.f32.mrf.mxu0  ;;  %v619_v4 = vpop.f32.mrf.mxu1 }
 0x13d   :  { %v411_v7 = vadd.f32 %v410_v3, %v2595_v1  ;;  %v620_v10 = vadd.f32 %v619_v4, %v2597_v2  ;;  %v1508_v4 = vld [vmem:[#allocation8 + $0x6e0] sm:$0xff] }
 0x13e   :  { %v412_v8 = vpop.f32.mrf.mxu0  ;;  %v621_v9 = vpop.f32.mrf.mxu1 }
 0x13f   :  { %v413_v11 = vadd.f32 %v412_v8, %v2601_v5  ;;  %v622_v12 = vadd.f32 %v621_v9, %v2603_v6  ;;  %v762_v16 = vmax.f32 %v411_v7, 0.0  ;;  %v764_v20 = vmax.f32 %v620_v10, 0.0 }
 0x140   :  { %v416_v13 = vpop.f32.mrf.mxu0  ;;  %v625_v14 = vpop.f32.mrf.mxu1 }
 0x141   :  { %v417_v15 = vadd.f32 %v416_v13, %v2595_v1  ;;  %v626_v17 = vadd.f32 %v625_v14, %v2597_v2  ;;  %v763_v24 = vmax.f32 %v413_v11, 0.0  ;;  %v765_v25 = vmax.f32 %v622_v12, 0.0  ;;  %v1507_v12 = vld [vmem:[#allocation8 + $0x6d8] sm:$0xff] }
 0x142   :  { %v418_v18 = vpop.f32.mrf.mxu0  ;;  %v627_v19 = vpop.f32.mrf.mxu1  ;;  %v858_v34 = vmax.f32 %v762_v16, %v764_v20  ;;  %v1506_v16 = vld [vmem:[#allocation8 + $0x6d0] sm:$0xff] }
 0x143   :  { %v766_v21 = vmax.f32 %v417_v15, 0.0  ;;  %v419_v22 = vadd.f32 %v418_v18, %v2601_v5  ;;  %v628_v23 = vadd.f32 %v627_v19, %v2603_v6  ;;  %v768_v26 = vmax.f32 %v626_v17, 0.0 }
 0x144   :  { %v422_v27 = vpop.f32.mrf.mxu0  ;;  %v631_v28 = vpop.f32.mrf.mxu1  ;;  %v859_v37 = vmax.f32 %v763_v24, %v765_v25  ;;  %v1504_v24 = vld [vmem:[#allocation8 + $0x6c0] sm:$0xff] }
 0x145   :  { %v767_v29 = vmax.f32 %v419_v22, 0.0  ;;  %v769_v30 = vmax.f32 %v628_v23, 0.0  ;;  %v860_v31 = vmax.f32 %v766_v21, %v768_v26  ;;  %v423_v38 = vadd.f32 %v422_v27, %v2595_v1  ;;  %v1505_v21 = vld [vmem:[#allocation8 + $0x6c8] sm:$0xff] }
 0x146   :  { %v424_v32 = vpop.f32.mrf.mxu0  ;;  %v633_v33 = vpop.f32.mrf.mxu1  ;;  %v632_v39 = vadd.f32 %v631_v28, %v2597_v2 }
 0x147   :  { %v861_v35 = vmax.f32 %v767_v29, %v769_v30  ;;  %v425_v36 = vadd.f32 %v424_v32, %v2601_v5  ;;  %v634_v40 = vadd.f32 %v633_v33, %v2603_v6  ;;  %v906_v45 = vmax.f32 %v858_v34, %v860_v31  ;;  %v1503_v31 = vld [vmem:[#allocation8 + $0x6b8] sm:$0xff] }
 0x148   :  { %v428_v41 = vpop.f32.mrf.mxu0  ;;  %v637_v42 = vpop.f32.mrf.mxu1  ;;  %v770_v56 = vmax.f32 %v423_v38, 0.0  ;;  %v772_v57 = vmax.f32 %v632_v39, 0.0 }
 0x149   :  { %v429_v43 = vadd.f32 %v428_v41, %v2595_v1  ;;  %v638_v44 = vadd.f32 %v637_v42, %v2597_v2  ;;  %v771_v46 = vmax.f32 %v425_v36, 0.0  ;;  %v773_v47 = vmax.f32 %v634_v40, 0.0  ;;  %v1316_v36 = vld [vmem:[#allocation8 + $0x4f0] sm:$0xff]  ;;  %v1315_v42 = vld [vmem:[#allocation8 + $0x4e8] sm:$0xff] }
 0x14a   :  { %v430_v48 = vpop.f32.mrf.mxu0  ;;  %v639_v49 = vpop.f32.mrf.mxu1  ;;  %v907_v50 = vmax.f32 %v859_v37, %v861_v35  ;;  %v862_v17 = vmax.f32 %v770_v56, %v772_v57  ;;  %v1502_v41 = vld [vmem:[#allocation8 + $0x6b0] sm:$0xff] }
 0x14b   :  { %v774_v51 = vmax.f32 %v429_v43, 0.0  ;;  %v776_v52 = vmax.f32 %v638_v44, 0.0  ;;  %v431_v53 = vadd.f32 %v430_v48, %v2601_v5  ;;  %v640_v54 = vadd.f32 %v639_v49, %v2603_v6  ;;  %v1312_v56 = vld [vmem:[#allocation8 + $0x4d0] sm:$0xff] }
 0x14c   :  { %1236 = vmatprep.mubr.f32.mxu1 %v907_v50  ;;  %v434_v58 = vpop.f32.mrf.mxu0  ;;  %v643_v61 = vpop.f32.mrf.mxu1  ;;  %v863_v13 = vmax.f32 %v771_v46, %v773_v47  ;;  %v1314_v46 = vld [vmem:[#allocation8 + $0x4e0] sm:$0xff] }
 0x14d   :  { %v775_v0 = vmax.f32 %v431_v53, 0.0  ;;  %v777_v3 = vmax.f32 %v640_v54, 0.0  ;;  %1237 = vmatmul.mubr.f32.vlgmr.msra.gmra.mxu1 %v906_v45  ;;  %v864_v7 = vmax.f32 %v774_v51, %v776_v52  ;;  %v435_v8 = vadd.f32 %v434_v58, %v2595_v1  ;;  %v1501_v45 = vld [vmem:[#allocation8 + $0x6a8] sm:$0xff]  ;;  %v1500_v50 = vld [vmem:[#allocation8 + $0x6a0] sm:$0xff]  ;;  %v1313_v51 = vld [vmem:[#allocation8 + $0x4d8] sm:$0xff] }
 0x14e   :  { %v644_v9 = vadd.f32 %v643_v61, %v2597_v2  ;;  %1545 = vmatpush1.msra.mxu1 %v1510_v55  ;;  %v436_v10 = vpop.f32.mrf.mxu0  ;;  %v645_v11 = vpop.f32.mrf.mxu1  ;;  %v1499_v55 = vld [vmem:[#allocation8 + $0x698] sm:$0xff] }
 0x14f   :  { %v865_v14 = vmax.f32 %v775_v0, %v777_v3  ;;  %1546 = vmatprep.subr.mxu1 %v1509_v62  ;;  %v437_v15 = vadd.f32 %v436_v10, %v2601_v5  ;;  %v646_v18 = vadd.f32 %v645_v11, %v2603_v6  ;;  %v908_v26 = vmax.f32 %v862_v17, %v864_v7  ;;  %v1498_v3 = vld [vmem:[#allocation8 + $0x690] sm:$0xff]  ;;  %v1497_v10 = vld [vmem:[#allocation8 + $0x688] sm:$0xff]  ;;  %v1310_v11 = vld [vmem:[#allocation8 + $0x4c0] sm:$0xff] }
 0x150   :  { %1547 = vmatpush1.msra.mxu1 %v1508_v4  ;;  %v440_v19 = vpop.f32.mrf.mxu0  ;;  %v649_v20 = vpop.f32.mrf.mxu1  ;;  %v778_v27 = vmax.f32 %v435_v8, 0.0  ;;  %v780_v28 = vmax.f32 %v644_v9, 0.0  ;;  %v1311_v4 = vld [vmem:[#allocation8 + $0x4c8] sm:$0xff] }
 0x151   :  { %1548 = vmatprep.subr.mxu1 %v1507_v12  ;;  %v441_v22 = vadd.f32 %v440_v19, %v2595_v1  ;;  %v650_v23 = vadd.f32 %v649_v20, %v2597_v2  ;;  %v909_v25 = vmax.f32 %v863_v13, %v865_v14  ;;  %v779_v32 = vmax.f32 %v437_v15, 0.0  ;;  %v1496_v14 = vld [vmem:[#allocation8 + $0x680] sm:$0xff] }
 0x152   :  { %1549 = vmatpush1.msra.mxu1 %v1506_v16  ;;  %v442_v29 = vpop.f32.mrf.mxu0  ;;  %v651_v30 = vpop.f32.mrf.mxu1  ;;  %v781_v33 = vmax.f32 %v646_v18, 0.0  ;;  %v866_v47 = vmax.f32 %v778_v27, %v780_v28  ;;  %v1309_v18 = vld [vmem:[#allocation8 + $0x4b8] sm:$0xff] }
 0x153   :  { %1550 = vmatprep.subr.mxu1 %v1505_v21  ;;  %v443_v34 = vadd.f32 %v442_v29, %v2601_v5  ;;  %v652_v35 = vadd.f32 %v651_v30, %v2603_v6  ;;  %1123 = vmatprep.mubr.f32.mxu0 %v909_v25  ;;  %v782_v37 = vmax.f32 %v441_v22, 0.0  ;;  %v784_v38 = vmax.f32 %v650_v23, 0.0  ;;  %v1495_v22 = vld [vmem:[#allocation8 + $0x678] sm:$0xff]  ;;  %v1308_v30 = vld [vmem:[#allocation8 + $0x4b0] sm:$0xff] }
 0x154   :  { %1551 = vmatpush1.msra.mxu1 %v1504_v24  ;;  %1242 = vmatprep.mubr.f32.mxu1 %v909_v25  ;;  %v446_v39 = vpop.f32.mrf.mxu0  ;;  %v655_v40 = vpop.f32.mrf.mxu1  ;;  %v867_v52 = vmax.f32 %v779_v32, %v781_v33  ;;  %v1494_v32 = vld [vmem:[#allocation8 + $0x670] sm:$0xff]  ;;  %v1307_v33 = vld [vmem:[#allocation8 + $0x4a8] sm:$0xff] }
 0x155   :  { %v783_v43 = vmax.f32 %v443_v34, 0.0  ;;  %v785_v44 = vmax.f32 %v652_v35, 0.0  ;;  %1552 = vmatprep.subr.mxu1 %v1503_v31  ;;  %1124 = vmatmul.mubr.f32.vlgmr.msra.gmra.mxu0 %v908_v26  ;;  %v2630_v54 = vadd.f32 %v446_v39, %v2595_v1  ;;  %v868_v57 = vmax.f32 %v782_v37, %v784_v38  ;;  %v1306_v37 = vld [vmem:[#allocation8 + $0x4a0] sm:$0xff] }
 0x156   :  { %1243 = vmatmul.mubr.f32.gmra.mxu1 %v908_v26  ;;  %1351 = vmatpush1.msra.mxu0 %v1316_v36  ;;  %v448_v48 = vpop.f32.mrf.mxu0  ;;  %v657_v49 = vpop.f32.mrf.mxu1  ;;  %v656_v58 = vadd.f32 %v655_v40, %v2597_v2  ;;  %v1493_v36 = vld [vmem:[#allocation8 + $0x668] sm:$0xff]  ;;  %v1492_v39 = vld [vmem:[#allocation8 + $0x660] sm:$0xff]  ;;  %v1305_v40 = vld [vmem:[#allocation8 + $0x498] sm:$0xff] }
 0x157   :  { %v869_v53 = vmax.f32 %v783_v43, %v785_v44  ;;  %1553 = vmatpush1.msra.mxu1 %v1502_v41  ;;  %1352 = vmatprep.subr.mxu0 %v1315_v42  ;;  %v449_v61 = vadd.f32 %v448_v48, %v2601_v5  ;;  %v658_v7 = vadd.f32 %v657_v49, %v2603_v6  ;;  %v786_v16 = vmax.f32 %v2630_v54, 0.0 }
 0x158   :  { %1554 = vmatprep.subr.mxu1 %v1501_v45  ;;  %1353 = vmatpush1.msra.mxu0 %v1314_v46  ;;  %v452_v62 = vpop.f32.mrf.mxu0  ;;  %v661_v0 = vpop.f32.mrf.mxu1  ;;  %v788_v19 = vmax.f32 %v656_v58, 0.0  ;;  %v2642_v25 = vmax.f32 %v866_v47, %v868_v57  ;;  %v1491_v46 = vld [vmem:[#allocation8 + $0x658] sm:$0xff]  ;;  %v1304_v47 = vld [vmem:[#allocation8 + $0x490] sm:$0xff] }
 0x159   :  { %1555 = vmatpush1.msra.mxu1 %v1500_v50  ;;  %1354 = vmatprep.subr.mxu0 %v1313_v51  ;;  %v453_v8 = vadd.f32 %v452_v62, %v2595_v1  ;;  %v662_v9 = vadd.f32 %v661_v0, %v2597_v2  ;;  %v2637_v15 = vmax.f32 %v867_v52, %v869_v53  ;;  %v787_v20 = vmax.f32 %v449_v61, 0.0  ;;  %v1490_v51 = vld [vmem:[#allocation8 + $0x650] sm:$0xff]  ;;  %v1303_v52 = vld [vmem:[#allocation8 + $0x488] sm:$0xff]  ;;  %v1302_v61 = vld [vmem:[#allocation8 + $0x480] sm:$0xff] }
 0x15a   :  { %1556 = vmatprep.subr.mxu1 %v1499_v55  ;;  %1355 = vmatpush1.msra.mxu0 %v1312_v56  ;;  %v454_v12 = vpop.f32.mrf.mxu0  ;;  %v663_v13 = vpop.f32.mrf.mxu1  ;;  %v789_v26 = vmax.f32 %v658_v7, 0.0  ;;  %v870_v43 = vmax.f32 %v786_v16, %v788_v19  ;;  %v1489_v56 = vld [vmem:[#allocation8 + $0x648] sm:$0xff]  ;;  %v1300_v19 = vld [vmem:[#allocation8 + $0x470] sm:$0xff] }
 0x15b   :  { %1557 = vmatpush1.msra.mxu1 %v1498_v3  ;;  %1356 = vmatprep.subr.mxu0 %v1311_v4  ;;  %v455_v17 = vadd.f32 %v454_v12, %v2601_v5  ;;  %v664_v21 = vadd.f32 %v663_v13, %v2603_v6  ;;  %v790_v27 = vmax.f32 %v453_v8, 0.0  ;;  %v792_v28 = vmax.f32 %v662_v9, 0.0  ;;  %v1488_v4 = vld [vmem:[#allocation8 + $0x640] sm:$0xff]  ;;  %v1487_v12 = vld [vmem:[#allocation8 + $0x638] sm:$0xff] }
 0x15c   :  { %1558 = vmatprep.subr.mxu1 %v1497_v10  ;;  %1357 = vmatpush1.msra.mxu0 %v1310_v11  ;;  %v458_v23 = vpop.f32.mrf.mxu0  ;;  %v667_v24 = vpop.f32.mrf.mxu1  ;;  %v871_v44 = vmax.f32 %v787_v20, %v789_v26  ;;  %v1301_v11 = vld [vmem:[#allocation8 + $0x478] sm:$0xff]  ;;  %v1299_v26 = vld [vmem:[#allocation8 + $0x468] sm:$0xff] }
 0x15d   :  { %v791_v29 = vmax.f32 %v455_v17, 0.0  ;;  %1559 = vmatpush1.msra.mxu1 %v1496_v14  ;;  %1129 = vmatprep.mubr.f32.mxu0 %v2637_v15  ;;  %v793_v31 = vmax.f32 %v664_v21, 0.0  ;;  %v872_v45 = vmax.f32 %v790_v27, %v792_v28  ;;  %v2649_v48 = vadd.f32 %v458_v23, %v2595_v1 }
 0x15e   :  { %1248 = vmatprep.mubr.f32.mxu1 %v2637_v15  ;;  %1358 = vmatprep.subr.mxu0 %v1309_v18  ;;  %v460_v34 = vpop.f32.mrf.mxu0  ;;  %v669_v35 = vpop.f32.mrf.mxu1  ;;  %v668_v62 = vadd.f32 %v667_v24, %v2597_v2  ;;  %v1486_v24 = vld [vmem:[#allocation8 + $0x630] sm:$0xff] }
 0x15f   :  { %1560 = vmatprep.subr.mxu1 %v1495_v22  ;;  %1130 = vmatmul.mubr.f32.gmra.mxu0 %v2642_v25  ;;  %v873_v38 = vmax.f32 %v791_v29, %v793_v31  ;;  %v461_v49 = vadd.f32 %v460_v34, %v2601_v5  ;;  %v670_v50 = vadd.f32 %v669_v35, %v2603_v6  ;;  %v794_v20 = vmax.f32 %v2649_v48, 0.0  ;;  %v1298_v31 = vld [vmem:[#allocation8 + $0x460] sm:$0xff] }
 0x160   :  { %1249 = vmatmul.mubr.f32.gmra.mxu1 %v2642_v25  ;;  %1359 = vmatpush1.msra.mxu0 %v1308_v30  ;;  %v464_v41 = vpop.f32.mrf.mxu0  ;;  %v673_v42 = vpop.f32.mrf.mxu1  ;;  %v2660_v16 = vmax.f32 %v870_v43, %v872_v45  ;;  %v796_v21 = vmax.f32 %v668_v62, 0.0  ;;  %v1485_v30 = vld [vmem:[#allocation8 + $0x628] sm:$0xff] }
 0x161   :  { %1561 = vmatpush1.msra.mxu1 %v1494_v32  ;;  %1360 = vmatprep.subr.mxu0 %v1307_v33  ;;  %v2653_v55 = vmax.f32 %v871_v44, %v873_v38  ;;  %v465_v0 = vadd.f32 %v464_v41, %v2595_v1  ;;  %v674_v3 = vadd.f32 %v673_v42, %v2597_v2  ;;  %v795_v17 = vmax.f32 %v461_v49, 0.0  ;;  %v1484_v32 = vld [vmem:[#allocation8 + $0x620] sm:$0xff]  ;;  %v1297_v33 = vld [vmem:[#allocation8 + $0x458] sm:$0xff]  ;;  %v1296_v38 = vld [vmem:[#allocation8 + $0x450] sm:$0xff] }
 0x162   :  { %1562 = vmatprep.subr.mxu1 %v1493_v36  ;;  %1361 = vmatpush1.msra.mxu0 %v1306_v37  ;;  %v466_v53 = vpop.f32.mrf.mxu0  ;;  %v675_v54 = vpop.f32.mrf.mxu1  ;;  %v797_v18 = vmax.f32 %v670_v50, 0.0  ;;  %v1483_v37 = vld [vmem:[#allocation8 + $0x618] sm:$0xff]  ;;  %v874_v41 = vmax.f32 %v794_v20, %v796_v21  ;;  %v1482_v44 = vld [vmem:[#allocation8 + $0x610] sm:$0xff]  ;;  %v1295_v45 = vld [vmem:[#allocation8 + $0x448] sm:$0xff] }
 0x163   :  { %1563 = vmatpush1.msra.mxu1 %v1492_v39  ;;  %1362 = vmatprep.subr.mxu0 %v1305_v40  ;;  %v467_v57 = vadd.f32 %v466_v53, %v2601_v5  ;;  %v676_v58 = vadd.f32 %v675_v54, %v2603_v6  ;;  %v798_v22 = vmax.f32 %v465_v0, 0.0  ;;  %v800_v23 = vmax.f32 %v674_v3, 0.0  ;;  %v1293_v3 = vld [vmem:[#allocation8 + $0x438] sm:$0xff]  ;;  %v1291_v20 = vld [vmem:[#allocation8 + $0x428] sm:$0xff] }
 0x164   :  { %1564 = vmatprep.subr.mxu1 %v1491_v46  ;;  %1363 = vmatpush1.msra.mxu0 %v1304_v47  ;;  %v470_v7 = vpop.f32.mrf.mxu0  ;;  %v679_v8 = vpop.f32.mrf.mxu1  ;;  %v875_v36 = vmax.f32 %v795_v17, %v797_v18 }
 0x165   :  { %1565 = vmatpush1.msra.mxu1 %v1490_v51  ;;  %1364 = vmatprep.subr.mxu0 %v1303_v52  ;;  %v799_v9 = vmax.f32 %v467_v57, 0.0  ;;  %v801_v10 = vmax.f32 %v676_v58, 0.0  ;;  %v876_v42 = vmax.f32 %v798_v22, %v800_v23  ;;  %v2670_v43 = vadd.f32 %v470_v7, %v2595_v1  ;;  %v1481_v51 = vld [vmem:[#allocation8 + $0x608] sm:$0xff]  ;;  %v1294_v52 = vld [vmem:[#allocation8 + $0x440] sm:$0xff] }
 0x166   :  { %1566 = vmatprep.subr.mxu1 %v1489_v56  ;;  %1365 = vmatpush1.msra.mxu0 %v1302_v61  ;;  %v472_v13 = vpop.f32.mrf.mxu0  ;;  %v681_v14 = vpop.f32.mrf.mxu1  ;;  %v680_v53 = vadd.f32 %v679_v8, %v2597_v2  ;;  %v1480_v57 = vld [vmem:[#allocation8 + $0x600] sm:$0xff] }
 0x167   :  { %1567 = vmatpush1.msra.mxu1 %v1488_v4  ;;  %1135 = vmatprep.mubr.f32.mxu0 %v2653_v55  ;;  %v877_v29 = vmax.f32 %v799_v9, %v801_v10  ;;  %v473_v49 = vadd.f32 %v472_v13, %v2601_v5  ;;  %v682_v50 = vadd.f32 %v681_v14, %v2603_v6  ;;  %v1543_v4 = vld [vmem:[#allocation8 + $0x7f8] sm:$0xff]  ;;  %v802_v13 = vmax.f32 %v2670_v43, 0.0 }
 0x168   :  { %1254 = vmatprep.mubr.f32.mxu1 %v2653_v55  ;;  %1366 = vmatprep.subr.mxu0 %v1301_v11  ;;  %v476_v27 = vpop.f32.mrf.mxu0  ;;  %v685_v28 = vpop.f32.mrf.mxu1  ;;  %v2683_v8 = vmax.f32 %v874_v41, %v876_v42  ;;  %v804_v14 = vmax.f32 %v680_v53, 0.0  ;;  %v1536_v53 = vld [vmem:[#allocation8 + $0x7c0] sm:$0xff] }
 0x169   :  { %1568 = vmatprep.subr.mxu1 %v1487_v12  ;;  %1136 = vmatmul.mubr.f32.gmra.mxu0 %v2660_v16  ;;  %v2676_v48 = vmax.f32 %v875_v36, %v877_v29  ;;  %v477_v54 = vadd.f32 %v476_v27, %v2595_v1  ;;  %v686_v56 = vadd.f32 %v685_v28, %v2597_v2  ;;  %v803_v10 = vmax.f32 %v473_v49, 0.0  ;;  %v1292_v12 = vld [vmem:[#allocation8 + $0x430] sm:$0xff]  ;;  %v1540_v27 = vld [vmem:[#allocation8 + $0x7e0] sm:$0xff]  ;;  %v1289_v28 = vld [vmem:[#allocation8 + $0x418] sm:$0xff] }
 0x16a   :  { %1255 = vmatmul.mubr.f32.gmra.mxu1 %v2660_v16  ;;  %1367 = vmatpush1.msra.mxu0 %v1300_v19  ;;  %v478_v34 = vpop.f32.mrf.mxu0  ;;  %v687_v35 = vpop.f32.mrf.mxu1  ;;  %v805_v11 = vmax.f32 %v682_v50, 0.0  ;;  %v1542_v19 = vld [vmem:[#allocation8 + $0x7f0] sm:$0xff]  ;;  %v878_v36 = vmax.f32 %v802_v13, %v804_v14  ;;  %v1537_v49 = vld [vmem:[#allocation8 + $0x7c8] sm:$0xff]  ;;  %v1286_v50 = vld [vmem:[#allocation8 + $0x400] sm:$0xff] }
 0x16b   :  { %1569 = vmatpush1.msra.mxu1 %v1486_v24  ;;  %1368 = vmatprep.subr.mxu0 %v1299_v26  ;;  %v479_v39 = vadd.f32 %v478_v34, %v2601_v5  ;;  %v688_v40 = vadd.f32 %v687_v35, %v2603_v6  ;;  %v806_v17 = vmax.f32 %v477_v54, 0.0  ;;  %v808_v18 = vmax.f32 %v686_v56, 0.0  ;;  %v1541_v24 = vld [vmem:[#allocation8 + $0x7e8] sm:$0xff]  ;;  %v1290_v26 = vld [vmem:[#allocation8 + $0x420] sm:$0xff]  ;;  %v1534_v14 = vld [vmem:[#allocation8 + $0x7b0] sm:$0xff] }
 0x16c   :  { %1570 = vmatprep.subr.mxu1 %v1485_v30  ;;  %1369 = vmatpush1.msra.mxu0 %v1298_v31  ;;  %v2672_v46 = vpop.f32.mrf.mxu0  ;;  %v2674_v47 = vpop.f32.mrf.mxu1  ;;  %v879_v31 = vmax.f32 %v803_v10, %v805_v11 }
 0x16d   :  { %1571 = vmatpush1.msra.mxu1 %v1484_v32  ;;  %1370 = vmatprep.subr.mxu0 %v1297_v33  ;;  %v807_v62 = vmax.f32 %v479_v39, 0.0  ;;  %v809_v0 = vmax.f32 %v688_v40, 0.0  ;;  %v1539_v32 = vld [vmem:[#allocation8 + $0x7d8] sm:$0xff]  ;;  %v1288_v33 = vld [vmem:[#allocation8 + $0x410] sm:$0xff]  ;;  %v1287_v40 = vld [vmem:[#allocation8 + $0x408] sm:$0xff] }
 0x16e   :  { %1572 = vmatprep.subr.mxu1 %v1483_v37  ;;  %1371 = vmatpush1.msra.mxu0 %v1296_v38  ;;  %v484_v58 = vpop.f32.mrf.mxu0  ;;  %v693_v61 = vpop.f32.mrf.mxu1  ;;  %v880_v37 = vmax.f32 %v806_v17, %v808_v18  ;;  %v2698_v38 = vadd.f32 %v2672_v46, %v2595_v1  ;;  %v1538_v39 = vld [vmem:[#allocation8 + $0x7d0] sm:$0xff]  ;;  %v692_v46 = vadd.f32 %v2674_v47, %v2597_v2  ;;  %v1347_v17 = vld [vmem:[#allocation8 + $0x5e8] sm:$0xff] }
 0x16f   :  { %1573 = vmatpush1.msra.mxu1 %v1482_v44  ;;  %1372 = vmatprep.subr.mxu0 %v1295_v45  ;;  %v881_v23 = vmax.f32 %v807_v62, %v809_v0  ;;  %v485_v44 = vadd.f32 %v484_v58, %v2601_v5  ;;  %v694_v45 = vadd.f32 %v693_v61, %v2603_v6  ;;  %v1349_v61 = vld [vmem:[#allocation8 + $0x5f8] sm:$0xff] }
 0x170   :  { %1574 = vmatprep.subr.mxu1 %v1481_v51  ;;  %1373 = vmatpush1.msra.mxu0 %v1294_v52  ;;  %v488_v7 = vpop.f32.mrf.mxu0  ;;  %v697_v9 = vpop.f32.mrf.mxu1  ;;  %v1535_v62 = vld [vmem:[#allocation8 + $0x7b8] sm:$0xff]  ;;  %v810_v10 = vmax.f32 %v2698_v38, 0.0  ;;  %v812_v11 = vmax.f32 %v692_v46, 0.0  ;;  %v1343_v38 = vld [vmem:[#allocation8 + $0x5c8] sm:$0xff]  ;;  %v1342_v46 = vld [vmem:[#allocation8 + $0x5c0] sm:$0xff] }
 0x171   :  { %1575 = vmatpush1.msra.mxu1 %v1480_v57  ;;  %1141 = vmatprep.mubr.f32.mxu0 %v2676_v48  ;;  %v2704_v43 = vmax.f32 %v879_v31, %v881_v23  ;;  %v489_v51 = vadd.f32 %v488_v7, %v2595_v1  ;;  %v698_v52 = vadd.f32 %v697_v9, %v2597_v2  ;;  %v813_v7 = vmax.f32 %v694_v45, 0.0  ;;  %v1348_v9 = vld [vmem:[#allocation8 + $0x5f0] sm:$0xff]  ;;  %v1532_v23 = vld [vmem:[#allocation8 + $0x7a0] sm:$0xff]  ;;  %v1531_v31 = vld [vmem:[#allocation8 + $0x798] sm:$0xff] }
 0x172   :  { %1260 = vmatprep.mubr.f32.mxu1 %v2676_v48  ;;  %1374 = vmatprep.subr.mxu0 %v1293_v3  ;;  %v490_v21 = vpop.f32.mrf.mxu0  ;;  %v699_v22 = vpop.f32.mrf.mxu1  ;;  %v2716_v3 = vmax.f32 %v878_v36, %v880_v37  ;;  %v1530_v37 = vld [vmem:[#allocation8 + $0x790] sm:$0xff] }
 0x173   :  { %1576 = vmatprep.subr.mxu1 %v1543_v4  ;;  %1142 = vmatmul.mubr.f32.gmra.mxu0 %v2683_v8  ;;  %v491_v34 = vadd.f32 %v490_v21, %v2601_v5  ;;  %v700_v35 = vadd.f32 %v699_v22, %v2603_v6  ;;  %v811_v4 = vmax.f32 %v485_v44, 0.0  ;;  %v816_v13 = vmax.f32 %v698_v52, 0.0  ;;  %v1533_v21 = vld [vmem:[#allocation8 + $0x7a8] sm:$0xff]  ;;  %v1346_v22 = vld [vmem:[#allocation8 + $0x5e0] sm:$0xff] }
 0x174   :  { %1261 = vmatmul.mubr.f32.gmra.mxu1 %v2683_v8  ;;  %1375 = vmatpush1.msra.mxu0 %v1292_v12  ;;  %v2690_v29 = vpop.f32.mrf.mxu0  ;;  %v2692_v30 = vpop.f32.mrf.mxu1  ;;  %v814_v12 = vmax.f32 %v489_v51, 0.0 }
 0x175   :  { %1577 = vmatpush2.msra.mxu1 %v1542_v19  ;;  %1376 = vmatprep.subr.mxu0 %v1291_v20  ;;  %v815_v57 = vmax.f32 %v491_v34, 0.0  ;;  %v817_v58 = vmax.f32 %v700_v35, 0.0  ;;  %v882_v35 = vmax.f32 %v810_v10, %v812_v11  ;;  %v495_v51 = vadd.f32 %v2690_v29, %v2595_v1  ;;  %v1527_v29 = vld [vmem:[#allocation8 + $0x778] sm:$0xff]  ;;  %v1526_v10 = vld [vmem:[#allocation8 + $0x770] sm:$0xff]  ;;  %v1339_v11 = vld [vmem:[#allocation8 + $0x5a8] sm:$0xff] }
 0x176   :  { %1578 = vmatprep.subr.mxu1 %v1541_v24  ;;  %1377 = vmatpush1.msra.mxu0 %v1290_v26  ;;  %v2700_v41 = vpop.f32.mrf.mxu0  ;;  %v2702_v42 = vpop.f32.mrf.mxu1  ;;  %v1345_v24 = vld [vmem:[#allocation8 + $0x5d8] sm:$0xff]  ;;  %v884_v36 = vmax.f32 %v814_v12, %v816_v13  ;;  %v704_v52 = vadd.f32 %v2692_v30, %v2597_v2 }
 0x177   :  { %1579 = vmatpush2.msra.mxu1 %v1540_v27  ;;  %1378 = vmatprep.subr.mxu0 %v1289_v28  ;;  %v885_v20 = vmax.f32 %v815_v57, %v817_v58  ;;  %v883_v28 = vmax.f32 %v811_v4, %v813_v7  ;;  %v497_v45 = vadd.f32 %v2700_v41, %v2601_v5 }
 0x178   :  { %1580 = vmatprep.subr.mxu1 %v1539_v32  ;;  %1379 = vmatpush1.msra.mxu0 %v1288_v33  ;;  %v2712_v54 = vpop.f32.mrf.mxu0  ;;  %v2714_v56 = vpop.f32.mrf.mxu1  ;;  %v1344_v32 = vld [vmem:[#allocation8 + $0x5d0] sm:$0xff]  ;;  %v2751_v30 = vmax.f32 %v882_v35, %v884_v36  ;;  %v820_v12 = vmax.f32 %v704_v52, 0.0  ;;  %v1335_v35 = vld [vmem:[#allocation8 + $0x588] sm:$0xff] }
 0x179   :  { %1581 = vmatpush2.msra.mxu1 %v1538_v39  ;;  %1380 = vmatprep.subr.mxu0 %v1287_v40  ;;  %v2737_v44 = vmax.f32 %v883_v28, %v885_v20  ;;  %v501_v57 = vadd.f32 %v2712_v54, %v2595_v1  ;;  %v710_v41 = vadd.f32 %v2714_v56, %v2597_v2  ;;  %v1340_v54 = vld [vmem:[#allocation8 + $0x5b0] sm:$0xff]  ;;  %v1525_v20 = vld [vmem:[#allocation8 + $0x768] sm:$0xff]  ;;  %v1523_v28 = vld [vmem:[#allocation8 + $0x758] sm:$0xff] }
 0x17a   :  { %1582 = vmatprep.subr.mxu1 %v1537_v49  ;;  %1381 = vmatpush1.msra.mxu0 %v1286_v50  ;;  %v502_v47 = vpop.f32.mrf.mxu0  ;;  %v711_v0 = vpop.f32.mrf.mxu1  ;;  %v706_v49 = vadd.f32 %v2702_v42, %v2603_v6  ;;  %v1529_v50 = vld [vmem:[#allocation8 + $0x788] sm:$0xff] }
 0x17b   :  { %1583 = vmatpush2.msra.mxu1 %v1536_v53  ;;  %1147 = vmatprep.mubr.f32.mxu0 %v2704_v43  ;;  %v503_v33 = vadd.f32 %v502_v47, %v2601_v5  ;;  %v712_v34 = vadd.f32 %v711_v0, %v2603_v6  ;;  %v1528_v53 = vld [vmem:[#allocation8 + $0x780] sm:$0xff]  ;;  %v819_v0 = vmax.f32 %v497_v45, 0.0  ;;  %v822_v13 = vmax.f32 %v501_v57, 0.0 }
 0x17c   :  { %1266 = vmatprep.mubr.f32.mxu1 %v2704_v43  ;;  %1382 = vmatprep.subr.mxu0 %v1349_v61  ;;  %v2721_v18 = vpop.f32.mrf.mxu0  ;;  %v2723_v19 = vpop.f32.mrf.mxu1  ;;  %v1341_v61 = vld [vmem:[#allocation8 + $0x5b8] sm:$0xff]  ;;  %v821_v4 = vmax.f32 %v706_v49, 0.0  ;;  %v1520_v57 = vld [vmem:[#allocation8 + $0x740] sm:$0xff] }
 0x17d   :  { %1584 = vmatprep.subr.mxu1 %v1535_v62  ;;  %1148 = vmatmul.mubr.f32.gmra.mxu0 %v2716_v3  ;;  %v823_v42 = vmax.f32 %v503_v33, 0.0  ;;  %v825_v58 = vmax.f32 %v712_v34, 0.0  ;;  %v1522_v34 = vld [vmem:[#allocation8 + $0x750] sm:$0xff] }
 0x17e   :  { %1267 = vmatmul.mubr.f32.gmra.mxu1 %v2716_v3  ;;  %1383 = vmatpush2.msra.mxu0 %v1348_v9  ;;  %v2727_v26 = vpop.f32.mrf.mxu0  ;;  %v2729_v27 = vpop.f32.mrf.mxu1  ;;  %v818_v9 = vmax.f32 %v495_v51, 0.0  ;;  %v507_v51 = vadd.f32 %v2721_v18, %v2595_v1  ;;  %v1333_v18 = vld [vmem:[#allocation8 + $0x578] sm:$0xff] }
 0x17f   :  { %1585 = vmatpush2.msra.mxu1 %v1534_v14  ;;  %1384 = vmatprep.subr.mxu0 %v1347_v17  ;;  %v824_v14 = vmax.f32 %v710_v41, 0.0  ;;  %v889_v17 = vmax.f32 %v823_v42, %v825_v58  ;;  %v509_v52 = vadd.f32 %v2727_v26, %v2601_v5  ;;  %v716_v41 = vadd.f32 %v2723_v19, %v2597_v2  ;;  %v1332_v19 = vld [vmem:[#allocation8 + $0x570] sm:$0xff] }
 0x180   :  { %1586 = vmatprep.subr.mxu1 %v1533_v21  ;;  %1385 = vmatpush2.msra.mxu0 %v1346_v22  ;;  %v2733_v39 = vpop.f32.mrf.mxu0  ;;  %v2735_v40 = vpop.f32.mrf.mxu1  ;;  %v1338_v21 = vld [vmem:[#allocation8 + $0x5a0] sm:$0xff] }
 0x181   :  { %1587 = vmatpush2.msra.mxu1 %v1532_v23  ;;  %1386 = vmatprep.subr.mxu0 %v1345_v24  ;;  %v1524_v22 = vld [vmem:[#allocation8 + $0x760] sm:$0xff]  ;;  %v1337_v23 = vld [vmem:[#allocation8 + $0x598] sm:$0xff]  ;;  %v887_v24 = vmax.f32 %v819_v0, %v821_v4  ;;  %v888_v45 = vmax.f32 %v822_v13, %v824_v14  ;;  %v513_v42 = vadd.f32 %v2733_v39, %v2595_v1  ;;  %v827_v39 = vmax.f32 %v509_v52, 0.0  ;;  %v1518_v0 = vld [vmem:[#allocation8 + $0x730] sm:$0xff] }
 0x182   :  { %1588 = vmatprep.subr.mxu1 %v1531_v31  ;;  %1387 = vmatpush2.msra.mxu0 %v1344_v32  ;;  %v514_v62 = vpop.f32.mrf.mxu0  ;;  %v723_v47 = vpop.f32.mrf.mxu1  ;;  %v1336_v31 = vld [vmem:[#allocation8 + $0x590] sm:$0xff]  ;;  %v722_v58 = vadd.f32 %v2735_v40, %v2597_v2  ;;  %v1331_v4 = vld [vmem:[#allocation8 + $0x568] sm:$0xff]  ;;  %v1325_v52 = vld [vmem:[#allocation8 + $0x538] sm:$0xff] }
 0x183   :  { %1589 = vmatpush2.msra.mxu1 %v1530_v37  ;;  %1388 = vmatprep.subr.mxu0 %v1343_v38  ;;  %v515_v36 = vadd.f32 %v514_v62, %v2601_v5  ;;  %v724_v37 = vadd.f32 %v723_v47, %v2603_v6  ;;  %v886_v38 = vmax.f32 %v818_v9, %v820_v12  ;;  %v1519_v47 = vld [vmem:[#allocation8 + $0x738] sm:$0xff]  ;;  %v828_v9 = vmax.f32 %v716_v41, 0.0  ;;  %v1517_v12 = vld [vmem:[#allocation8 + $0x728] sm:$0xff] }
 0x184   :  { %1590 = vmatprep.subr.mxu1 %v1529_v50  ;;  %1389 = vmatpush2.msra.mxu0 %v1342_v46  ;;  %v2754_v7 = vpop.f32.mrf.mxu0  ;;  %v2756_v56 = vpop.f32.mrf.mxu1  ;;  %v2767_v49 = vmax.f32 %v887_v24, %v889_v17  ;;  %v1521_v50 = vld [vmem:[#allocation8 + $0x748] sm:$0xff]  ;;  %v1334_v46 = vld [vmem:[#allocation8 + $0x580] sm:$0xff] }
 0x185   :  { %1591 = vmatpush2.msra.mxu1 %v1528_v53  ;;  %1153 = vmatprep.mubr.f32.mxu0 %v2737_v44  ;;  %v718_v53 = vadd.f32 %v2729_v27, %v2603_v6  ;;  %v831_v27 = vmax.f32 %v515_v36, 0.0  ;;  %v833_v62 = vmax.f32 %v724_v37, 0.0  ;;  %v1327_v36 = vld [vmem:[#allocation8 + $0x548] sm:$0xff] }
 0x186   :  { %1272 = vmatprep.mubr.f32.mxu1 %v2737_v44  ;;  %1390 = vmatprep.subr.mxu0 %v1341_v61  ;;  %v2761_v32 = vpop.f32.mrf.mxu0  ;;  %v2763_v33 = vpop.f32.mrf.mxu1  ;;  %v1513_v37 = vld [vmem:[#allocation8 + $0x708] sm:$0xff] }
 0x187   :  { %1592 = vmatprep.subr.mxu1 %v1527_v29  ;;  %1154 = vmatmul.mubr.f32.gmra.mxu0 %v2751_v30  ;;  %v2785_v29 = vmax.f32 %v886_v38, %v888_v45  ;;  %v829_v40 = vmax.f32 %v718_v53, 0.0  ;;  %v893_v17 = vmax.f32 %v831_v27, %v833_v62  ;;  %v1321_v27 = vld [vmem:[#allocation8 + $0x518] sm:$0xff]  ;;  %v1320_v62 = vld [vmem:[#allocation8 + $0x510] sm:$0xff] }
 0x188   :  { %1273 = vmatmul.mubr.f32.gmra.mxu1 %v2751_v30  ;;  %1391 = vmatpush2.msra.mxu0 %v1340_v54  ;;  %v2781_v61 = vpop.f32.mrf.mxu0  ;;  %v2783_v26 = vpop.f32.mrf.mxu1  ;;  %v826_v54 = vmax.f32 %v507_v51, 0.0  ;;  %v1512_v51 = vld [vmem:[#allocation8 + $0x700] sm:$0xff] }
 0x189   :  { %1593 = vmatpush2.msra.mxu1 %v1526_v10  ;;  %1392 = vmatprep.subr.mxu0 %v1339_v11  ;;  %v830_v10 = vmax.f32 %v513_v42, 0.0  ;;  %v832_v11 = vmax.f32 %v722_v58, 0.0  ;;  %v891_v24 = vmax.f32 %v827_v39, %v829_v40  ;;  %v1323_v58 = vld [vmem:[#allocation8 + $0x528] sm:$0xff]  ;;  %v521_v40 = vadd.f32 %v2761_v32, %v2601_v5 }
 0x18a   :  { %1594 = vmatprep.subr.mxu1 %v1525_v20  ;;  %1393 = vmatpush2.msra.mxu0 %v1338_v21  ;;  %v526_v13 = vpop.f32.mrf.mxu0  ;;  %v735_v14 = vpop.f32.mrf.mxu1  ;;  %v1330_v20 = vld [vmem:[#allocation8 + $0x560] sm:$0xff]  ;;  %v1319_v39 = vld [vmem:[#allocation8 + $0x508] sm:$0xff]  ;;  %v728_v32 = vadd.f32 %v2756_v56, %v2597_v2 }
 0x18b   :  { %1595 = vmatpush2.msra.mxu1 %v1524_v22  ;;  %1394 = vmatprep.subr.mxu0 %v1337_v23  ;;  %v1516_v21 = vld [vmem:[#allocation8 + $0x720] sm:$0xff]  ;;  %v1329_v22 = vld [vmem:[#allocation8 + $0x558] sm:$0xff] }
 0x18c   :  { %1596 = vmatprep.subr.mxu1 %v1523_v28  ;;  %1395 = vmatpush2.msra.mxu0 %v1336_v31  ;;  %v1515_v23 = vld [vmem:[#allocation8 + $0x718] sm:$0xff]  ;;  %v1328_v28 = vld [vmem:[#allocation8 + $0x550] sm:$0xff]  ;;  %v2792_v38 = vpop.f32.mrf.mxu0  ;;  %v2794_v45 = vpop.f32.mrf.mxu1 }
 0x18d   :  { %1597 = vmatpush2.msra.mxu1 %v1522_v34  ;;  %1396 = vmatprep.subr.mxu0 %v1335_v35  ;;  %v1514_v31 = vld [vmem:[#allocation8 + $0x710] sm:$0xff]  ;;  %v890_v34 = vmax.f32 %v826_v54, %v828_v9  ;;  %v892_v35 = vmax.f32 %v830_v10, %v832_v11  ;;  %v527_v54 = vadd.f32 %v526_v13, %v2601_v5 }
 0x18e   :  { %1598 = vmatprep.subr.mxu1 %v1521_v50  ;;  %1397 = vmatpush2.msra.mxu0 %v1334_v46  ;;  %v2796_v50 = vmax.f32 %v891_v24, %v893_v17  ;;  %v1326_v46 = vld [vmem:[#allocation8 + $0x540] sm:$0xff]  ;;  %v532_v41 = vpop.f32.mrf.mxu0  ;;  %v741_v42 = vpop.f32.mrf.mxu1  ;;  %v736_v9 = vadd.f32 %v735_v14, %v2603_v6  ;;  %v519_v10 = vadd.f32 %v2754_v7, %v2595_v1  ;;  %v1704_v13 = vld [vmem:[#allocation8 + $0x8f0] sm:$0xff]  ;;  %v835_v17 = vmax.f32 %v521_v40, 0.0  ;;  %v1703_v7 = vld [vmem:[#allocation8 + $0x8e8] sm:$0xff] }
 0x18f   :  { %1599 = vmatpush2.msra.mxu1 %v1520_v57  ;;  %1159 = vmatprep.mubr.f32.mxu0 %v2767_v49  ;;  %v2798_v53 = vmax.f32 %v890_v34, %v892_v35  ;;  %v1324_v57 = vld [vmem:[#allocation8 + $0x530] sm:$0xff]  ;;  %v533_v56 = vadd.f32 %v532_v41, %v2601_v5  ;;  %v1699_v41 = vld [vmem:[#allocation8 + $0x8c8] sm:$0xff] }
 0x190   :  { %1278 = vmatprep.mubr.f32.mxu1 %v2767_v49  ;;  %1398 = vmatprep.subr.mxu0 %v1333_v18  ;;  %v1322_v18 = vld [vmem:[#allocation8 + $0x520] sm:$0xff] }
 0x191   :  { %1600 = vmatprep.subr.mxu1 %v1519_v47  ;;  %1160 = vmatmul.mubr.f32.gmra.mxu0 %v2785_v29  ;;  %v536_v47 = vpop.f32.mrf.mxu0 }
 0x192   :  { %1279 = vmatmul.mubr.f32.gmra.mxu1 %v2785_v29  ;;  %1399 = vmatpush2.msra.mxu0 %v1332_v19  ;;  %v745_v19 = vpop.f32.mrf.mxu1 }
 0x193   :  { %1601 = vmatpush2.msra.mxu1 %v1518_v0  ;;  %1400 = vmatprep.subr.mxu0 %v1331_v4  ;;  %v730_v0 = vadd.f32 %v2763_v33, %v2603_v6  ;;  %v1318_v4 = vld [vmem:[#allocation8 + $0x500] sm:$0xff]  ;;  %v525_v33 = vadd.f32 %v2781_v61, %v2595_v1  ;;  %v538_v11 = vpop.f32.mrf.mxu0 }
 0x194   :  { %1602 = vmatprep.subr.mxu1 %v1517_v12  ;;  %1608 = vmatprep.mubr.f32.mxu1 %v2653_v55  ;;  %v747_v12 = vpop.f32.mrf.mxu1  ;;  %v1702_v61 = vld [vmem:[#allocation8 + $0x8e0] sm:$0xff]  ;;  %v539_v24 = vadd.f32 %v538_v11, %v2601_v5 }
 0x195   :  { %1401 = vmatpush2.msra.mxu0 %v1330_v20  ;;  %1603 = vmatpush2.msra.mxu1 %v1516_v21  ;;  %v837_v14 = vmax.f32 %v730_v0, 0.0  ;;  %v734_v20 = vadd.f32 %v2783_v26, %v2597_v2  ;;  %v839_v21 = vmax.f32 %v527_v54, 0.0  ;;  %v834_v26 = vmax.f32 %v519_v10, 0.0  ;;  %v1694_v10 = vld [vmem:[#allocation8 + $0x8a0] sm:$0xff] }
 0x196   :  { %1402 = vmatprep.subr.mxu0 %v1329_v22  ;;  %1604 = vmatprep.subr.mxu1 %v1515_v23  ;;  %v841_v22 = vmax.f32 %v736_v9, 0.0  ;;  %v742_v23 = vadd.f32 %v741_v42, %v2603_v6  ;;  %v838_v34 = vmax.f32 %v525_v33, 0.0  ;;  %v843_v42 = vmax.f32 %v533_v56, 0.0  ;;  %v1692_v33 = vld [vmem:[#allocation8 + $0x890] sm:$0xff]  ;;  %v1687_v56 = vld [vmem:[#allocation8 + $0x868] sm:$0xff] }
 0x197   :  { %1403 = vmatpush2.msra.mxu0 %v1328_v28  ;;  %1605 = vmatpush2.msra.mxu1 %v1514_v31  ;;  %v748_v28 = vadd.f32 %v747_v12, %v2603_v6  ;;  %v836_v31 = vmax.f32 %v728_v32, 0.0  ;;  %v895_v35 = vmax.f32 %v835_v17, %v837_v14  ;;  %v1693_v32 = vld [vmem:[#allocation8 + $0x898] sm:$0xff]  ;;  %v1691_v17 = vld [vmem:[#allocation8 + $0x888] sm:$0xff] }
 0x198   :  { %1404 = vmatprep.subr.mxu0 %v1327_v36  ;;  %1606 = vmatprep.subr.mxu1 %v1513_v37  ;;  %v840_v36 = vmax.f32 %v734_v20, 0.0  ;;  %v740_v37 = vadd.f32 %v2794_v45, %v2597_v2  ;;  %v1698_v45 = vld [vmem:[#allocation8 + $0x8c0] sm:$0xff] }
 0x199   :  { %1405 = vmatpush2.msra.mxu0 %v1326_v46  ;;  %1607 = vmatpush2.msra.mxu1 %v1512_v51  ;;  %v1700_v46 = vld [vmem:[#allocation8 + $0x8d0] sm:$0xff]  ;;  %v897_v51 = vmax.f32 %v839_v21, %v841_v22  ;;  %v1690_v20 = vld [vmem:[#allocation8 + $0x880] sm:$0xff] }
 0x19a   :  { %1165 = vmatprep.mubr.f32.mxu0 %v2796_v50  ;;  %1406 = vmatprep.subr.mxu0 %v1325_v52  ;;  %v537_v52 = vadd.f32 %v536_v47, %v2595_v1  ;;  %v1696_v47 = vld [vmem:[#allocation8 + $0x8b0] sm:$0xff] }
 0x19b   :  { %1609 = vmatmul.mubr.f32.vlgmr.msra.gmra.mxu1 %v2660_v16  ;;  %1166 = vmatmul.mubr.f32.gmra.mxu0 %v2798_v53  ;;  %v1688_v21 = vld [vmem:[#allocation8 + $0x870] sm:$0xff] }
 0x19c   :  { %1407 = vmatpush2.msra.mxu0 %v1324_v57  ;;  %1614 = vmatprep.mubr.f32.mxu1 %v2676_v48  ;;  %v746_v57 = vadd.f32 %v745_v19, %v2597_v2  ;;  %v844_v19 = vmax.f32 %v740_v37, 0.0  ;;  %v846_v40 = vmax.f32 %v537_v52, 0.0  ;;  %v1675_v37 = vld [vmem:[#allocation8 + $0x808] sm:$0xff]  ;;  %v1736_v52 = vld [vmem:[#allocation8 + $0x9f0] sm:$0xff] }
 0x19d   :  { %1408 = vmatprep.subr.mxu0 %v1323_v58  ;;  %1414 = vmatprep.mubr.f32.mxu0 %v2637_v15  ;;  %v1705_v15 = vld [vmem:[#allocation8 + $0x8f8] sm:$0xff]  ;;  %v845_v58 = vmax.f32 %v742_v23, 0.0 }
 0x19e   :  { %1409 = vmatpush2.msra.mxu0 %v1322_v18  ;;  %v847_v18 = vmax.f32 %v539_v24, 0.0  ;;  %v848_v0 = vmax.f32 %v746_v57, 0.0  ;;  %v1685_v23 = vld [vmem:[#allocation8 + $0x858] sm:$0xff]  ;;  %v1684_v24 = vld [vmem:[#allocation8 + $0x850] sm:$0xff]  ;;  %v1735_v57 = vld [vmem:[#allocation8 + $0x9e8] sm:$0xff] }
 0x19f   :  { %1410 = vmatprep.subr.mxu0 %v1321_v27  ;;  %1615 = vmatmul.mubr.f32.gmra.mxu1 %v2683_v8  ;;  %v894_v27 = vmax.f32 %v834_v26, %v836_v31  ;;  %v899_v54 = vmax.f32 %v843_v42, %v845_v58  ;;  %v1681_v26 = vld [vmem:[#allocation8 + $0x838] sm:$0xff]  ;;  %v1680_v31 = vld [vmem:[#allocation8 + $0x830] sm:$0xff] }
 0x1a0   :  { %1411 = vmatpush2.msra.mxu0 %v1320_v62  ;;  %1620 = vmatprep.mubr.f32.mxu1 %v2704_v43  ;;  %v1697_v62 = vld [vmem:[#allocation8 + $0x8b8] sm:$0xff]  ;;  %v900_v12 = vmax.f32 %v846_v40, %v848_v0  ;;  %v1732_v58 = vld [vmem:[#allocation8 + $0x9d0] sm:$0xff] }
 0x1a1   :  { %1412 = vmatprep.subr.mxu0 %v1319_v39  ;;  %v896_v39 = vmax.f32 %v838_v34, %v840_v36  ;;  %v1679_v34 = vld [vmem:[#allocation8 + $0x828] sm:$0xff]  ;;  %v1677_v36 = vld [vmem:[#allocation8 + $0x818] sm:$0xff]  ;;  %v1720_v0 = vld [vmem:[#allocation8 + $0x970] sm:$0xff] }
 0x1a2   :  { %1413 = vmatpush2.msra.mxu0 %v1318_v4  ;;  %v1695_v4 = vld [vmem:[#allocation8 + $0x8a8] sm:$0xff]  ;;  %v1733_v42 = vld [vmem:[#allocation8 + $0x9d8] sm:$0xff] }
 0x1a3   :  { %1415 = vmatmul.mubr.f32.vlgmr.msra.gmra.mxu0 %v2642_v25  ;;  %1621 = vmatmul.mubr.f32.gmra.mxu1 %v2716_v3  ;;  %v1701_v25 = vld [vmem:[#allocation8 + $0x8d8] sm:$0xff] }
 0x1a4   :  { %1738 = vmatprep.subr.mxu0 %v1705_v15  ;;  %1420 = vmatprep.mubr.f32.mxu0 %v2653_v55  ;;  %v531_v55 = vadd.f32 %v2792_v38, %v2595_v1  ;;  %v849_v38 = vmax.f32 %v748_v28, 0.0  ;;  %v2841_v15 = vmax.f32 %v895_v35, %v897_v51  ;;  %v1683_v28 = vld [vmem:[#allocation8 + $0x848] sm:$0xff]  ;;  %v1678_v35 = vld [vmem:[#allocation8 + $0x820] sm:$0xff]  ;;  %v1737_v51 = vld [vmem:[#allocation8 + $0x9f8] sm:$0xff] }
 0x1a5   :  { %1626 = vmatprep.mubr.f32.mxu1 %v2737_v44  ;;  %1739 = vmatpush1.msra.mxu0 %v1704_v13  ;;  %v2846_v13 = vmax.f32 %v894_v27, %v896_v39  ;;  %v1728_v27 = vld [vmem:[#allocation8 + $0x9b0] sm:$0xff]  ;;  %v1725_v39 = vld [vmem:[#allocation8 + $0x998] sm:$0xff] }
 0x1a6   :  { %1740 = vmatprep.subr.mxu0 %v1703_v7  ;;  %v901_v9 = vmax.f32 %v847_v18, %v849_v38  ;;  %v1689_v7 = vld [vmem:[#allocation8 + $0x878] sm:$0xff]  ;;  %v1731_v18 = vld [vmem:[#allocation8 + $0x9c8] sm:$0xff]  ;;  %v1730_v38 = vld [vmem:[#allocation8 + $0x9c0] sm:$0xff] }
 0x1a7   :  { %1741 = vmatpush1.msra.mxu0 %v1702_v61  ;;  %1627 = vmatmul.mubr.f32.gmra.mxu1 %v2751_v30  ;;  %v1686_v61 = vld [vmem:[#allocation8 + $0x860] sm:$0xff]  ;;  %v1721_v40 = vld [vmem:[#allocation8 + $0x978] sm:$0xff] }
 0x1a8   :  { %1421 = vmatmul.mubr.f32.gmra.mxu0 %v2660_v16  ;;  %1742 = vmatprep.subr.mxu0 %v1701_v25  ;;  %v842_v16 = vmax.f32 %v531_v55, 0.0  ;;  %v2849_v14 = vmax.f32 %v899_v54, %v901_v9  ;;  %v1682_v25 = vld [vmem:[#allocation8 + $0x840] sm:$0xff]  ;;  %v1676_v55 = vld [vmem:[#allocation8 + $0x810] sm:$0xff]  ;;  %v1717_v9 = vld [vmem:[#allocation8 + $0x958] sm:$0xff] }
 0x1a9   :  { %1426 = vmatprep.mubr.f32.mxu0 %v2676_v48  ;;  %1632 = vmatprep.mubr.f32.mxu1 %v2767_v49  ;;  %v1718_v54 = vld [vmem:[#allocation8 + $0x960] sm:$0xff] }
 0x1aa   :  { %1743 = vmatpush1.msra.mxu0 %v1700_v46  ;;  %v898_v11 = vmax.f32 %v842_v16, %v844_v19  ;;  %v1674_v46 = vld [vmem:[#allocation8 + $0x800] sm:$0xff]  ;;  %v1723_v16 = vld [vmem:[#allocation8 + $0x988] sm:$0xff] }
 0x1ab   :  { %1744 = vmatprep.subr.mxu0 %v1699_v41  ;;  %1633 = vmatmul.mubr.f32.gmra.mxu1 %v2785_v29  ;;  %v1734_v41 = vld [vmem:[#allocation8 + $0x9e0] sm:$0xff] }
 0x1ac   :  { %1745 = vmatpush1.msra.mxu0 %v1698_v45  ;;  %1638 = vmatprep.mubr.f32.mxu1 %v2796_v50  ;;  %v2854_v22 = vmax.f32 %v898_v11, %v900_v12  ;;  %v1729_v45 = vld [vmem:[#allocation8 + $0x9b8] sm:$0xff]  ;;  %v1722_v19 = vld [vmem:[#allocation8 + $0x980] sm:$0xff]  ;;  %v1712_v12 = vld [vmem:[#allocation8 + $0x930] sm:$0xff] }
 0x1ad   :  { %1427 = vmatmul.mubr.f32.gmra.mxu0 %v2683_v8  ;;  %1746 = vmatprep.subr.mxu0 %v1697_v62  ;;  %v1726_v62 = vld [vmem:[#allocation8 + $0x9a0] sm:$0xff]  ;;  %v1713_v11 = vld [vmem:[#allocation8 + $0x938] sm:$0xff] }
 0x1ae   :  { %1432 = vmatprep.mubr.f32.mxu0 %v2704_v43  ;;  %1747 = vmatpush1.msra.mxu0 %v1696_v47  ;;  %v1724_v47 = vld [vmem:[#allocation8 + $0x990] sm:$0xff] }
 0x1af   :  { %1748 = vmatprep.subr.mxu0 %v1695_v4  ;;  %1639 = vmatmul.mubr.f32.gmra.mxu1 %v2798_v53  ;;  %v1719_v4 = vld [vmem:[#allocation8 + $0x968] sm:$0xff] }
 0x1b0   :  { %1749 = vmatpush1.msra.mxu0 %v1694_v10  ;;  %1644 = vmatprep.mubr.f32.mxu1 %v2841_v15  ;;  %v1716_v10 = vld [vmem:[#allocation8 + $0x950] sm:$0xff] }
 0x1b1   :  { %1433 = vmatmul.mubr.f32.gmra.mxu0 %v2716_v3  ;;  %1750 = vmatprep.subr.mxu0 %v1693_v32  ;;  %v1715_v32 = vld [vmem:[#allocation8 + $0x948] sm:$0xff] }
 0x1b2   :  { %1438 = vmatprep.mubr.f32.mxu0 %v2737_v44  ;;  %1751 = vmatpush1.msra.mxu0 %v1692_v33  ;;  %v1714_v33 = vld [vmem:[#allocation8 + $0x940] sm:$0xff] }
 0x1b3   :  { %1752 = vmatprep.subr.mxu0 %v1691_v17  ;;  %1645 = vmatmul.mubr.f32.gmra.mxu1 %v2846_v13  ;;  %v1711_v17 = vld [vmem:[#allocation8 + $0x928] sm:$0xff] }
 0x1b4   :  { %1753 = vmatpush1.msra.mxu0 %v1690_v20  ;;  %1650 = vmatprep.mubr.f32.mxu1 %v2849_v14  ;;  %v1710_v20 = vld [vmem:[#allocation8 + $0x920] sm:$0xff] }
 0x1b5   :  { %1439 = vmatmul.mubr.f32.gmra.mxu0 %v2751_v30  ;;  %1754 = vmatprep.subr.mxu0 %v1689_v7  ;;  %v1709_v7 = vld [vmem:[#allocation8 + $0x918] sm:$0xff] }
 0x1b6   :  { %1444 = vmatprep.mubr.f32.mxu0 %v2767_v49  ;;  %1755 = vmatpush1.msra.mxu0 %v1688_v21  ;;  %v1708_v21 = vld [vmem:[#allocation8 + $0x910] sm:$0xff] }
 0x1b7   :  { %1756 = vmatprep.subr.mxu0 %v1687_v56  ;;  %1651 = vmatmul.mubr.f32.gmra.mxu1 %v2854_v22  ;;  %v542_v56 = vpop.f32.mrf.mxu0 }
 0x1b8   :  { %1757 = vmatpush1.msra.mxu0 %v1686_v61  ;;  %v751_v61 = vpop.f32.mrf.mxu1 }
 0x1b9   :  { %1445 = vmatmul.mubr.f32.gmra.mxu0 %v2785_v29  ;;  %1758 = vmatprep.subr.mxu0 %v1685_v23  ;;  %v1707_v23 = vld [vmem:[#allocation8 + $0x908] sm:$0xff] }
 0x1ba   :  { %1450 = vmatprep.mubr.f32.mxu0 %v2796_v50  ;;  %1759 = vmatpush1.msra.mxu0 %v1684_v24  ;;  %v1706_v24 = vld [vmem:[#allocation8 + $0x900] sm:$0xff] }
 0x1bb   :  { %1760 = vmatprep.subr.mxu0 %v1683_v28  ;;  %v544_v28 = vpop.f32.mrf.mxu0 }
 0x1bc   :  { %1761 = vmatpush1.msra.mxu0 %v1682_v25  ;;  %v753_v25 = vpop.f32.mrf.mxu1 }
 0x1bd   :  { %1451 = vmatmul.mubr.f32.gmra.mxu0 %v2798_v53  ;;  %1762 = vmatprep.subr.mxu0 %v1681_v26  ;;  %v548_v26 = vpop.f32.mrf.mxu0 }
 0x1be   :  { %1763 = vmatpush1.msra.mxu0 %v1680_v31  ;;  %1456 = vmatprep.mubr.f32.mxu0 %v2841_v15  ;;  %v757_v31 = vpop.f32.mrf.mxu1 }
 0x1bf   :  { %1764 = vmatprep.subr.mxu0 %v1679_v34  ;;  %v550_v34 = vpop.f32.mrf.mxu0 }
 0x1c0   :  { %1765 = vmatpush1.msra.mxu0 %v1678_v35  ;;  %v759_v35 = vpop.f32.mrf.mxu1 }
 0x1c1   :  { %1457 = vmatmul.mubr.f32.gmra.mxu0 %v2846_v13  ;;  %1766 = vmatprep.subr.mxu0 %v1677_v36  ;;  %v545_v36 = vadd.f32 %v544_v28, %v2601_v5  ;;  %v1923_v28 = vld [vmem:[#allocation11] sm:$0xff] }
 0x1c2   :  { %1767 = vmatpush1.msra.mxu0 %v1676_v55  ;;  %1802 = vmatprep.mubr.f32.mxu0 %v2676_v48  ;;  %v1727_v48 = vld [vmem:[#allocation8 + $0x9a8] sm:$0xff]  ;;  %v754_v55 = vadd.f32 %v753_v25, %v2603_v6 }
 0x1c3   :  { %1768 = vmatprep.subr.mxu0 %v1675_v37  ;;  %v543_v37 = vadd.f32 %v542_v56, %v2595_v1  ;;  %v1940_v56 = vld [vmem:[#allocation11 + $0x88] sm:$0xff] }
 0x1c4   :  { %1769 = vmatpush1.msra.mxu0 %v1674_v46  ;;  %v853_v46 = vmax.f32 %v754_v55, 0.0 }
 0x1c5   :  { %1770 = vmatprep.subr.mxu0 %v1737_v51 }
 0x1c6   :  { %1771 = vmatpush2.msra.mxu0 %v1736_v52 }
 0x1c7   :  { %1772 = vmatprep.subr.mxu0 %v1735_v57  ;;  %v850_v57 = vmax.f32 %v543_v37, 0.0 }
 0x1c8   :  { %1773 = vmatpush2.msra.mxu0 %v1734_v41 }
 0x1c9   :  { %1774 = vmatprep.subr.mxu0 %v1733_v42 }
 0x1ca   :  { %1775 = vmatpush2.msra.mxu0 %v1732_v58 }
 0x1cb   :  { %1776 = vmatprep.subr.mxu0 %v1731_v18  ;;  %v1954_v18 = vld [vmem:[#allocation11 + $0xf8] sm:$0xff] }
 0x1cc   :  { %1777 = vmatpush2.msra.mxu0 %v1730_v38  ;;  %v1938_v38 = vld [vmem:[#allocation11 + $0x78] sm:$0xff]  ;;  %2206 = vmatprep.subr.mxu1 %v1954_v18 }
 0x1cd   :  { %1778 = vmatprep.subr.mxu0 %v1729_v45  ;;  %v1953_v45 = vld [vmem:[#allocation11 + $0xf0] sm:$0xff]  ;;  %2207 = vmatpush3.msra.mxu1 %v1938_v38 }
 0x1ce   :  { %1779 = vmatpush2.msra.mxu0 %v1728_v27  ;;  %2208 = vmatprep.subr.mxu1 %v1953_v45  ;;  %v1936_v27 = vld [vmem:[#allocation11 + $0x68] sm:$0xff] }
 0x1cf   :  { %1780 = vmatprep.subr.mxu0 %v1727_v48  ;;  %v1951_v48 = vld [vmem:[#allocation11 + $0xe0] sm:$0xff] }
 0x1d0   :  { %1781 = vmatpush2.msra.mxu0 %v1726_v62  ;;  %v1949_v62 = vld [vmem:[#allocation11 + $0xd0] sm:$0xff] }
 0x1d1   :  { %1782 = vmatprep.subr.mxu0 %v1725_v39  ;;  %v1933_v39 = vld [vmem:[#allocation11 + $0x50] sm:$0xff] }
 0x1d2   :  { %1783 = vmatpush2.msra.mxu0 %v1724_v47  ;;  %v1948_v47 = vld [vmem:[#allocation11 + $0xc8] sm:$0xff] }
 0x1d3   :  { %1784 = vmatprep.subr.mxu0 %v1723_v16  ;;  %v1932_v16 = vld [vmem:[#allocation11 + $0x48] sm:$0xff] }
 0x1d4   :  { %1785 = vmatpush2.msra.mxu0 %v1722_v19  ;;  %v1947_v19 = vld [vmem:[#allocation11 + $0xc0] sm:$0xff] }
 0x1d5   :  { %1786 = vmatprep.subr.mxu0 %v1721_v40  ;;  %v1931_v40 = vld [vmem:[#allocation11 + $0x40] sm:$0xff] }
 0x1d6   :  { %1787 = vmatpush2.msra.mxu0 %v1720_v0  ;;  %v1946_v0 = vld [vmem:[#allocation11 + $0xb8] sm:$0xff] }
 0x1d7   :  { %1788 = vmatprep.subr.mxu0 %v1719_v4  ;;  %v1930_v4 = vld [vmem:[#allocation11 + $0x38] sm:$0xff] }
 0x1d8   :  { %1789 = vmatpush2.msra.mxu0 %v1718_v54  ;;  %v1945_v54 = vld [vmem:[#allocation11 + $0xb0] sm:$0xff] }
 0x1d9   :  { %1790 = vmatprep.subr.mxu0 %v1717_v9  ;;  %v1929_v9 = vld [vmem:[#allocation11 + $0x30] sm:$0xff] }
 0x1da   :  { %1791 = vmatpush2.msra.mxu0 %v1716_v10  ;;  %v1944_v10 = vld [vmem:[#allocation11 + $0xa8] sm:$0xff] }
 0x1db   :  { %1792 = vmatprep.subr.mxu0 %v1715_v32  ;;  %v1928_v32 = vld [vmem:[#allocation11 + $0x28] sm:$0xff] }
 0x1dc   :  { %1793 = vmatpush2.msra.mxu0 %v1714_v33  ;;  %v1943_v33 = vld [vmem:[#allocation11 + $0xa0] sm:$0xff] }
 0x1dd   :  { %1794 = vmatprep.subr.mxu0 %v1713_v11  ;;  %v1927_v11 = vld [vmem:[#allocation11 + $0x20] sm:$0xff] }
 0x1de   :  { %1795 = vmatpush2.msra.mxu0 %v1712_v12  ;;  %v1942_v12 = vld [vmem:[#allocation11 + $0x98] sm:$0xff] }
 0x1df   :  { %1796 = vmatprep.subr.mxu0 %v1711_v17  ;;  %v1926_v17 = vld [vmem:[#allocation11 + $0x18] sm:$0xff] }
 0x1e0   :  { %1797 = vmatpush2.msra.mxu0 %v1710_v20 }
 0x1e1   :  { %1798 = vmatprep.subr.mxu0 %v1709_v7  ;;  %v1941_v7 = vld [vmem:[#allocation11 + $0x90] sm:$0xff] }
 0x1e2   :  { %1799 = vmatpush2.msra.mxu0 %v1708_v21  ;;  %v1925_v21 = vld [vmem:[#allocation11 + $0x10] sm:$0xff] }
 0x1e3   :  { %1800 = vmatprep.subr.mxu0 %v1707_v23 }
 0x1e4   :  { %1801 = vmatpush2.msra.mxu0 %v1706_v24  ;;  %v1939_v24 = vld [vmem:[#allocation11 + $0x80] sm:$0xff] }
 0x1e5   :  { %1803 = vmatmul.mubr.f32.vlgmr.msra.gmra.mxu0 %v2683_v8  ;;  %v551_v8 = vadd.f32 %v550_v34, %v2601_v5 }
 0x1e6   :  { %1808 = vmatprep.mubr.f32.mxu0 %v2704_v43  ;;  %v760_v43 = vadd.f32 %v759_v35, %v2603_v6 }
 0x1e7   :  { %v855_v51 = vmax.f32 %v551_v8, 0.0 }
 0x1e8   :  { %v857_v52 = vmax.f32 %v760_v43, 0.0 }
 0x1e9   :  { %1809 = vmatmul.mubr.f32.gmra.mxu0 %v2716_v3  ;;  %v752_v3 = vadd.f32 %v751_v61, %v2597_v2  ;;  %v1924_v61 = vld [vmem:[#allocation11 + $0x8] sm:$0xff] }
 0x1ea   :  { %1814 = vmatprep.mubr.f32.mxu0 %v2737_v44  ;;  %v549_v44 = vadd.f32 %v548_v26, %v2595_v1  ;;  %v1986_v26 = vld [vmem:[#allocation11 + $0x1f8] sm:$0xff] }
 0x1eb   :  { %v852_v5 = vmax.f32 %v752_v3, 0.0 }
 0x1ec   :  { %v854_v41 = vmax.f32 %v549_v44, 0.0 }
 0x1ed   :  { %1815 = vmatmul.mubr.f32.gmra.mxu0 %v2751_v30  ;;  %v758_v30 = vadd.f32 %v757_v31, %v2597_v2  ;;  %v902_v58 = vmax.f32 %v850_v57, %v852_v5 }
 0x1ee   :  { %1820 = vmatprep.mubr.f32.mxu0 %v2767_v49  ;;  %v851_v49 = vmax.f32 %v545_v36, 0.0 }
 0x1ef   :  { %v856_v6 = vmax.f32 %v758_v30, 0.0 }
 0x1f0   :  { %v903_v42 = vmax.f32 %v851_v49, %v853_v46 }
 0x1f1   :  { %1821 = vmatmul.mubr.f32.gmra.mxu0 %v2785_v29  ;;  %v905_v29 = vmax.f32 %v855_v51, %v857_v52  ;;  %v904_v1 = vmax.f32 %v854_v41, %v856_v6 }
 0x1f2   :  { %1826 = vmatprep.mubr.f32.mxu0 %v2796_v50 }
 0x1f3   :  { %v929_v2 = vmax.f32 %v903_v42, %v905_v29  ;;  %v928_v50 = vmax.f32 %v902_v58, %v904_v1 }
 0x1f5   :  { %1827 = vmatmul.mubr.f32.gmra.mxu0 %v2798_v53  ;;  %v1937_v53 = vld [vmem:[#allocation11 + $0x70] sm:$0xff] }
 0x1f6   :  { %1832 = vmatprep.mubr.f32.mxu0 %v2841_v15  ;;  %v1952_v15 = vld [vmem:[#allocation11 + $0xe8] sm:$0xff]  ;;  %2209 = vmatpush3.msra.mxu1 %v1937_v53 }
 0x1f7   :  { %2210 = vmatprep.subr.mxu1 %v1952_v15 }
 0x1f8   :  { %2211 = vmatpush3.msra.mxu1 %v1936_v27 }
 0x1f9   :  { %1833 = vmatmul.mubr.f32.gmra.mxu0 %v2846_v13  ;;  %2212 = vmatprep.subr.mxu1 %v1951_v48  ;;  %v1935_v13 = vld [vmem:[#allocation11 + $0x60] sm:$0xff] }
 0x1fa   :  { %1838 = vmatprep.mubr.f32.mxu0 %v2849_v14  ;;  %2213 = vmatpush3.msra.mxu1 %v1935_v13  ;;  %v1950_v14 = vld [vmem:[#allocation11 + $0xd8] sm:$0xff] }
 0x1fb   :  { %2214 = vmatprep.subr.mxu1 %v1950_v14 }
 0x1fd   :  { %1839 = vmatmul.mubr.f32.gmra.mxu0 %v2854_v22  ;;  %v1934_v22 = vld [vmem:[#allocation11 + $0x58] sm:$0xff] }
 0x1fe   :  { %1844 = vmatprep.mubr.f32.mxu0 %v929_v2  ;;  %2215 = vmatpush3.msra.mxu1 %v1934_v22 }
 0x1ff   :  { %2216 = vmatprep.subr.mxu1 %v1949_v62 }
 0x200   :  { %2217 = vmatpush3.msra.mxu1 %v1933_v39 }
 0x201   :  { %1845 = vmatmul.mubr.f32.gmra.mxu0 %v928_v50  ;;  %2218 = vmatprep.subr.mxu1 %v1948_v47 }
 0x202   :  { %2219 = vmatpush3.msra.mxu1 %v1932_v16 }
 0x203   :  { %2220 = vmatprep.subr.mxu1 %v1947_v19 }
 0x204   :  { %2221 = vmatpush3.msra.mxu1 %v1931_v40 }
 0x205   :  { %2222 = vmatprep.subr.mxu1 %v1946_v0 }
 0x206   :  { %2223 = vmatpush3.msra.mxu1 %v1930_v4 }
 0x207   :  { %2224 = vmatprep.subr.mxu1 %v1945_v54 }
 0x208   :  { %2225 = vmatpush3.msra.mxu1 %v1929_v9 }
 0x209   :  { %2226 = vmatprep.subr.mxu1 %v1944_v10 }
 0x20a   :  { %2227 = vmatpush3.msra.mxu1 %v1928_v32 }
 0x20b   :  { %2228 = vmatprep.subr.mxu1 %v1943_v33 }
 0x20c   :  { %2229 = vmatpush3.msra.mxu1 %v1927_v11 }
 0x20d   :  { %2230 = vmatprep.subr.mxu1 %v1942_v12  ;;  %v1238_v37 = vpop.f32.mrf.mxu1 }
 0x20e   :  { %2231 = vmatpush3.msra.mxu1 %v1926_v17 }
 0x20f   :  { %2232 = vmatprep.subr.mxu1 %v1941_v7  ;;  %v1240_v44 = vpop.f32.mrf.mxu1 }
 0x210   :  { %2233 = vmatpush3.msra.mxu1 %v1925_v21 }
 0x211   :  { %2234 = vmatprep.subr.mxu1 %v1940_v56 }
 0x212   :  { %2235 = vmatpush3.msra.mxu1 %v1924_v61 }
 0x213   :  { %2236 = vmatprep.subr.mxu1 %v1939_v24  ;;  %v1867_v24 = vld [vmem:[#allocation10] sm:$0x3] }
 0x214   :  { %2237 = vmatpush3.msra.mxu1 %v1923_v28 }
 0x215   :  { %v2887_v20 = vpop.f32.mrf.mxu0  ;;  %2241 = vmatprep.subr.mxu1 %v1986_v26 }
 0x216   :  { %v1244_v49 = vpop.f32.mrf.mxu1  ;;  %v1239_v17 = vadd.f32 %v1238_v37, %v2887_v20 }
 0x217   :  { %v1127_v23 = vpop.f32.mrf.mxu0 }
 0x218   :  { %v1246_v51 = vpop.f32.mrf.mxu1  ;;  %v1241_v21 = vadd.f32 %v1240_v44, %v1127_v23  ;;  %v3031_v23 = vsub.s32 1, %v2587_v59 }
 0x21a   :  { %v2952_v44 = vrot.slane %v1867_v24, %v3031_v23 }
 0x21f   :  { %v1131_v25 = vpop.f32.mrf.mxu0 }
 0x220   :  { %v1250_v57 = vpop.f32.mrf.mxu1  ;;  %v1245_v28 = vadd.f32 %v1244_v49, %v1131_v25 }
 0x221   :  { %v1133_v31 = vpop.f32.mrf.mxu0 }
 0x222   :  { %v1252_v41 = vpop.f32.mrf.mxu1  ;;  %v1247_v60 = vadd.f32 %v1246_v51, %v1133_v31 }
 0x229   :  { %v2889_v34 = vpop.f32.mrf.mxu0 }
 0x22a   :  { %v1256_v42 = vpop.f32.mrf.mxu1  ;;  %v1251_v25 = vadd.f32 %v1250_v57, %v2889_v34 }
 0x22b   :  { %v2891_v35 = vpop.f32.mrf.mxu0 }
 0x22c   :  { %v1258_v58 = vpop.f32.mrf.mxu1  ;;  %v1253_v31 = vadd.f32 %v1252_v41, %v2891_v35 }
 0x233   :  { %v2893_v36 = vpop.f32.mrf.mxu0 }
 0x234   :  { %v2913_v2 = vpop.f32.mrf.mxu1 }
 0x235   :  { %v2895_v55 = vpop.f32.mrf.mxu0 }
 0x236   :  { %v2915_v18 = vpop.f32.mrf.mxu1 }
 0x23d   :  { %v2897_v8 = vpop.f32.mrf.mxu0 }
 0x23e   :  { %v2917_v38 = vpop.f32.mrf.mxu1 }
 0x23f   :  { %v2899_v43 = vpop.f32.mrf.mxu0 }
 0x240   :  { %v2919_v53 = vpop.f32.mrf.mxu1 }
 0x247   :  { %v2901_v3 = vpop.f32.mrf.mxu0 }
 0x248   :  { %v2921_v27 = vpop.f32.mrf.mxu1 }
 0x249   :  { %v2903_v30 = vpop.f32.mrf.mxu0 }
 0x24a   :  { %v2923_v13 = vpop.f32.mrf.mxu1 }
 0x251   :  { %v2905_v46 = vpop.f32.mrf.mxu0 }
 0x252   :  { %v2925_v14 = vpop.f32.mrf.mxu1 }
 0x253   :  { %v2907_v52 = vpop.f32.mrf.mxu0  ;;  %3025 = vst [vmem:[#allocation22_spill] sm:$0xff] %v2925_v14 }
 0x254   :  { %v2927_v62 = vpop.f32.mrf.mxu1 }
 0x255   :  { %3026 = vst [vmem:[#allocation23_spill] sm:$0xff] %v2927_v62 }
 0x25b   :  { %v2909_v5 = vpop.f32.mrf.mxu0  ;;  %v1610_v47 = vpop.f32.mrf.mxu1 }
 0x25c   :  { %3023 = vst [vmem:[#allocation20_spill] sm:$0xff] %v2909_v5 }
 0x25d   :  { %v2911_v6 = vpop.f32.mrf.mxu0  ;;  %v1612_v19 = vpop.f32.mrf.mxu1 }
 0x25e   :  { %3024 = vst [vmem:[#allocation21_spill] sm:$0xff] %v2911_v6 }
 0x25f   :  { %v1616_v0 = vpop.f32.mrf.mxu1 }
 0x261   :  { %v1618_v54 = vpop.f32.mrf.mxu1 }
 0x263   :  { %v1416_v29 = vpop.f32.mrf.mxu0  ;;  %v1622_v10 = vpop.f32.mrf.mxu1 }
 0x264   :  { %v1463_v56 = vadd.f32 %v1416_v29, %v1239_v17 }
 0x265   :  { %v1418_v1 = vpop.f32.mrf.mxu0  ;;  %v1624_v33 = vpop.f32.mrf.mxu1 }
 0x266   :  { %v1464_v26 = vadd.f32 %v1418_v1, %v1241_v21  ;;  %v1657_v6 = vadd.f32 %v1610_v47, %v1463_v56 }
 0x267   :  { %v1628_v12 = vpop.f32.mrf.mxu1 }
 0x268   :  { %v1422_v50 = vpop.f32.mrf.mxu0 }
 0x269   :  { %v1630_v61 = vpop.f32.mrf.mxu1  ;;  %v1465_v62 = vadd.f32 %v1422_v50, %v1245_v28  ;;  %v1257_v50 = vadd.f32 %v1256_v42, %v2893_v36 }
 0x26a   :  { %v1424_v45 = vpop.f32.mrf.mxu0 }
 0x26b   :  { %v1466_v20 = vadd.f32 %v1424_v45, %v1247_v60  ;;  %v1659_v1 = vadd.f32 %v1616_v0, %v1465_v62 }
 0x26d   :  { %v1428_v15 = vpop.f32.mrf.mxu0  ;;  %v1660_v45 = vadd.f32 %v1618_v54, %v1466_v20 }
 0x26e   :  { %v1467_v47 = vadd.f32 %v1428_v15, %v1251_v25  ;;  %v1263_v15 = vadd.f32 %v2913_v2, %v2897_v8 }
 0x26f   :  { %v1430_v48 = vpop.f32.mrf.mxu0 }
 0x270   :  { %v1661_v36 = vadd.f32 %v1622_v10, %v1467_v47 }
 0x271   :  { %v1434_v22 = vpop.f32.mrf.mxu0 }
 0x272   :  { %v1469_v34 = vadd.f32 %v1434_v22, %v1257_v50 }
 0x273   :  { %v1436_v39 = vpop.f32.mrf.mxu0 }
 0x274   :  { %v1663_v56 = vadd.f32 %v1628_v12, %v1469_v34  ;;  %v3033_v34 = vld [vmem:[#allocation22_spill] sm:$0xff] }
 0x275   :  { %v2929_v16 = vpop.f32.mrf.mxu0 }
 0x277   :  { %v2931_v40 = vpop.f32.mrf.mxu0 }
 0x279   :  { %v2933_v4 = vpop.f32.mrf.mxu0 }
 0x27b   :  { %v2935_v9 = vpop.f32.mrf.mxu0 }
 0x27d   :  { %v2937_v32 = vpop.f32.mrf.mxu0 }
 0x27e   :  { %3027 = vst [vmem:[#allocation24_spill] sm:$0xff] %v2937_v32  ;;  %v3030_v32 = vsub.s32 0, %v2587_v59 }
 0x27f   :  { %v2939_v11 = vpop.f32.mrf.mxu0 }
 0x280   :  { %3028 = vst [vmem:[#allocation25_spill] sm:$0xff] %v2939_v11  ;;  %v2948_v14 = vrot.slane %v1867_v24, %v3030_v32  ;;  %v1634_v11 = vpop.f32.mrf.mxu1  ;;  %v1471_v24 = vadd.f32 %v2929_v16, %v1263_v15 }
 0x281   :  { %v2942_v7 = vpop.f32.mrf.mxu0 }
 0x282   :  { %3029 = vst [vmem:[#allocation26_spill] sm:$0xff] %v2942_v7  ;;  %v1658_v7 = vadd.f32 %v1612_v19, %v1464_v26  ;;  %v1636_v32 = vpop.f32.mrf.mxu1  ;;  %v1259_v19 = vadd.f32 %v1258_v58, %v2895_v55  ;;  %v1265_v55 = vadd.f32 %v2915_v18, %v2899_v43  ;;  %v1269_v26 = vadd.f32 %v2917_v38, %v2901_v3 }
 0x283   :  { %v2944_v63 = vpop.f32.mrf.mxu0  ;;  %v1271_v18 = vadd.f32 %v2919_v53, %v2903_v30  ;;  %v1275_v53 = vadd.f32 %v2921_v27, %v2905_v46 }
 0x284   :  { %v1640_v62 = vpop.f32.mrf.mxu1  ;;  %v1470_v0 = vadd.f32 %v1436_v39, %v1259_v19  ;;  %v1473_v16 = vadd.f32 %v2933_v4, %v1269_v26  ;;  %v1277_v4 = vadd.f32 %v2923_v13, %v2907_v52  ;;  %v3032_v19 = vld [vmem:[#allocation20_spill] sm:$0xff] }
 0x286   :  { %v1642_v8 = vpop.f32.mrf.mxu1  ;;  %v1664_v20 = vadd.f32 %v1630_v61, %v1470_v0 }
 0x288   :  { %v1646_v12 = vpop.f32.mrf.mxu1 }
 0x289   :  { %v3038_v15 = vld [vmem:[#allocation26_spill] sm:$0xff] }
 0x28a   :  { %v1648_v47 = vpop.f32.mrf.mxu1 }
 0x2a5   :  { %v1804_v5 = vpop.f32.mrf.mxu0 }
 0x2a6   :  { %v1851_v37 = vadd.f32 %v1804_v5, %v1657_v6  ;;  %v1468_v5 = vadd.f32 %v1430_v48, %v1253_v31  ;;  %v1665_v31 = vadd.f32 %v1634_v11, %v1471_v24 }
 0x2a7   :  { %v1806_v49 = vpop.f32.mrf.mxu0 }
 0x2a8   :  { %v1879_v51 = vadd.f32 %v2948_v14, %v1851_v37  ;;  %v1852_v29 = vadd.f32 %v1806_v49, %v1658_v7  ;;  %v1662_v21 = vadd.f32 %v1624_v33, %v1468_v5  ;;  %v1472_v37 = vadd.f32 %v2931_v40, %v1265_v55 }
 0x2a9   :  { %v1810_v60 = vpop.f32.mrf.mxu0  ;;  %v1474_v40 = vadd.f32 %v2935_v9, %v1271_v18  ;;  %v1969_v18 = vld [vmem:[#allocation11 + $0x170] sm:$0xff] }
 0x2aa   :  { %v1880_v6 = vadd.f32 %v2952_v44, %v1852_v29  ;;  %v1853_v59 = vadd.f32 %v1810_v60, %v1659_v1  ;;  %v1895_v17 = vmax.f32 %v1879_v51, 0.0  ;;  %v1666_v30 = vadd.f32 %v1636_v32, %v1472_v37  ;;  %v1985_v37 = vld [vmem:[#allocation11 + $0x1f0] sm:$0xff] }
 0x2ab   :  { %v1812_v57 = vpop.f32.mrf.mxu0  ;;  %v1668_v27 = vadd.f32 %v1642_v8, %v1474_v40 }
 0x2ac   :  { %v1896_v35 = vmax.f32 %v1880_v6, 0.0  ;;  %v1881_v41 = vadd.f32 %v2948_v14, %v1853_v59  ;;  %v1854_v7 = vadd.f32 %v1812_v57, %v1660_v45  ;;  %v1667_v6 = vadd.f32 %v1640_v62, %v1473_v16  ;;  %v3036_v62 = vld [vmem:[#allocation21_spill] sm:$0xff] }
 0x2ad   :  { %v1816_v42 = vpop.f32.mrf.mxu0  ;;  %v1281_v57 = vadd.f32 %v3033_v34, %v3032_v19 }
 0x2ae   :  { %v2963_v48 = vmax.f32 %v1895_v17, %v1896_v35  ;;  %v1882_v54 = vadd.f32 %v2952_v44, %v1854_v7  ;;  %v1855_v58 = vadd.f32 %v1816_v42, %v1661_v36  ;;  %v1897_v28 = vmax.f32 %v1881_v41, 0.0  ;;  %v3034_v17 = vld [vmem:[#allocation24_spill] sm:$0xff]  ;;  %v3035_v35 = vld [vmem:[#allocation25_spill] sm:$0xff]  ;;  %v3037_v36 = vld [vmem:[#allocation23_spill] sm:$0xff] }
 0x2af   :  { %v1818_v22 = vpop.f32.mrf.mxu0  ;;  %v1475_v32 = vadd.f32 %v3034_v17, %v1275_v53  ;;  %v1476_v41 = vadd.f32 %v3035_v35, %v1277_v4  ;;  %v1283_v42 = vadd.f32 %v3037_v36, %v3036_v62  ;;  %v1964_v17 = vld [vmem:[#allocation11 + $0x148] sm:$0xff]  ;;  %v1979_v35 = vld [vmem:[#allocation11 + $0x1c0] sm:$0xff] }
 0x2b0   :  { %v1898_v39 = vmax.f32 %v1882_v54, 0.0  ;;  %v1856_v10 = vadd.f32 %v1818_v22, %v1662_v21  ;;  %v1883_v25 = vadd.f32 %v2948_v14, %v1855_v58  ;;  %v1652_v54 = vpop.f32.mrf.mxu1  ;;  %v1975_v62 = vld [vmem:[#allocation11 + $0x1a0] sm:$0xff] }
 0x2b1   :  { %v1822_v2 = vpop.f32.mrf.mxu0  ;;  %v1670_v26 = vadd.f32 %v1648_v47, %v1476_v41  ;;  %v1478_v8 = vadd.f32 %v2944_v63, %v1283_v42  ;;  %v1968_v63 = vld [vmem:[#allocation11 + $0x168] sm:$0xff]  ;;  %v1963_v41 = vld [vmem:[#allocation11 + $0x140] sm:$0xff]  ;;  %v1974_v42 = vld [vmem:[#allocation11 + $0x198] sm:$0xff] }
 0x2b2   :  { %v1912_v33 = vmax.f32 %v1897_v28, %v1898_v39  ;;  %v1884_v23 = vadd.f32 %v2952_v44, %v1856_v10  ;;  %v1857_v43 = vadd.f32 %v1822_v2, %v1663_v56  ;;  %v1899_v60 = vmax.f32 %v1883_v25, 0.0  ;;  %v1970_v10 = vld [vmem:[#allocation11 + $0x178] sm:$0xff]  ;;  %v1959_v36 = vld [vmem:[#allocation11 + $0x120] sm:$0xff] }
 0x2b3   :  { %v1824_v49 = vpop.f32.mrf.mxu0  ;;  %v1669_v28 = vadd.f32 %v1646_v12, %v1475_v32 }
 0x2b4   :  { %v1919_v3 = vmax.f32 %v2963_v48, %v1912_v33  ;;  %v1885_v38 = vadd.f32 %v2948_v14, %v1857_v43  ;;  %v1858_v61 = vadd.f32 %v1824_v49, %v1664_v20  ;;  %v1900_v29 = vmax.f32 %v1884_v23, 0.0  ;;  %v1654_v23 = vpop.f32.mrf.mxu1 }
 0x2b5   :  { %v1828_v51 = vpop.f32.mrf.mxu0  ;;  %v1477_v48 = vadd.f32 %v3038_v15, %v1281_v57  ;;  %v1980_v57 = vld [vmem:[#allocation11 + $0x1c8] sm:$0xff]  ;;  %v1958_v15 = vld [vmem:[#allocation11 + $0x118] sm:$0xff] }
 0x2b6   :  { %v1886_v1 = vadd.f32 %v2952_v44, %v1858_v61  ;;  %v1859_v50 = vadd.f32 %v1828_v51, %v1665_v31  ;;  %v1901_v59 = vmax.f32 %v1885_v38, 0.0  ;;  %v1913_v7 = vmax.f32 %v1899_v60, %v1900_v29  ;;  %v1984_v38 = vld [vmem:[#allocation11 + $0x1e8] sm:$0xff]  ;;  %v1982_v60 = vld [vmem:[#allocation11 + $0x1d8] sm:$0xff] }
 0x2b7   :  { %v1830_v5 = vpop.f32.mrf.mxu0  ;;  %v1671_v33 = vadd.f32 %v1652_v54, %v1477_v48  ;;  %v1672_v31 = vadd.f32 %v1654_v23, %v1478_v8  ;;  %v1973_v48 = vld [vmem:[#allocation11 + $0x190] sm:$0xff] }
 0x2b8   :  { %v1902_v11 = vmax.f32 %v1886_v1, 0.0  ;;  %v1887_v9 = vadd.f32 %v2948_v14, %v1859_v50  ;;  %v1860_v45 = vadd.f32 %v1830_v5, %v1666_v30  ;;  %v1983_v1 = vld [vmem:[#allocation11 + $0x1e0] sm:$0xff]  ;;  %v1966_v5 = vld [vmem:[#allocation11 + $0x158] sm:$0xff]  ;;  %v1957_v54 = vld [vmem:[#allocation11 + $0x110] sm:$0xff] }
 0x2b9   :  { %v1834_v46 = vpop.f32.mrf.mxu0  ;;  %v1967_v50 = vld [vmem:[#allocation11 + $0x160] sm:$0xff] }
 0x2ba   :  { %v1914_v52 = vmax.f32 %v1901_v59, %v1902_v11  ;;  %v1888_v13 = vadd.f32 %v2952_v44, %v1860_v45  ;;  %v1861_v0 = vadd.f32 %v1834_v46, %v1667_v6  ;;  %v1903_v21 = vmax.f32 %v1887_v9, 0.0  ;;  %v1981_v11 = vld [vmem:[#allocation11 + $0x1d0] sm:$0xff]  ;;  %v1978_v46 = vld [vmem:[#allocation11 + $0x1b8] sm:$0xff] }
 0x2bb   :  { %v1836_v55 = vpop.f32.mrf.mxu0  ;;  %v1965_v9 = vld [vmem:[#allocation11 + $0x150] sm:$0xff] }
 0x2bc   :  { %v1904_v58 = vmax.f32 %v1888_v13, 0.0  ;;  %v1889_v22 = vadd.f32 %v2948_v14, %v1861_v0  ;;  %v1862_v56 = vadd.f32 %v1836_v55, %v1668_v27  ;;  %v1920_v24 = vmax.f32 %v1913_v7, %v1914_v52  ;;  %v1962_v27 = vld [vmem:[#allocation11 + $0x138] sm:$0xff]  ;;  %v1977_v7 = vld [vmem:[#allocation11 + $0x1b0] sm:$0xff]  ;;  %v1976_v13 = vld [vmem:[#allocation11 + $0x1a8] sm:$0xff] }
 0x2bd   :  { %v1840_v39 = vpop.f32.mrf.mxu0  ;;  %v1961_v52 = vld [vmem:[#allocation11 + $0x130] sm:$0xff]  ;;  %v1960_v0 = vld [vmem:[#allocation11 + $0x128] sm:$0xff] }
 0x2be   :  { %v2996_v2 = vmax.f32 %v1903_v21, %v1904_v58  ;;  %v1890_v20 = vadd.f32 %v2952_v44, %v1862_v56  ;;  %2058 = vmatprep.mubr.f32.mxu1 %v1920_v24  ;;  %v1905_v16 = vmax.f32 %v1889_v22, 0.0  ;;  %v1863_v49 = vadd.f32 %v1840_v39, %v1669_v28  ;;  %v1972_v21 = vld [vmem:[#allocation11 + $0x188] sm:$0xff]  ;;  %v1971_v58 = vld [vmem:[#allocation11 + $0x180] sm:$0xff] }
 0x2bf   :  { %v1842_v43 = vpop.f32.mrf.mxu0  ;;  %2059 = vmatmul.mubr.f32.vlgmr.msra.gmra.mxu1 %v1919_v3  ;;  %v1956_v55 = vld [vmem:[#allocation11 + $0x108] sm:$0xff]  ;;  %v1955_v22 = vld [vmem:[#allocation11 + $0x100] sm:$0xff] }
 0x2c0   :  { %v1906_v25 = vmax.f32 %v1890_v20, 0.0  ;;  %v1864_v12 = vadd.f32 %v1842_v43, %v1670_v26  ;;  %2242 = vmatpush3.msra.mxu1 %v1970_v10  ;;  %v1891_v53 = vadd.f32 %v2948_v14, %v1863_v49  ;;  %v2205_v39 = vld [vmem:[#allocation13] ss:$0 sm:$0xff] }
 0x2c1   :  { %2243 = vmatprep.subr.mxu1 %v1985_v37  ;;  %v1846_v61 = vpop.f32.mrf.mxu0 }
 0x2c2   :  { %v2999_v40 = vmax.f32 %v1905_v16, %v1906_v25  ;;  %v1892_v51 = vadd.f32 %v2952_v44, %v1864_v12  ;;  %v1865_v29 = vadd.f32 %v1846_v61, %v1671_v33  ;;  %2244 = vmatpush3.msra.mxu1 %v1969_v18  ;;  %v1907_v45 = vmax.f32 %v1891_v53, 0.0 }
 0x2c3   :  { %2245 = vmatprep.subr.mxu1 %v1984_v38  ;;  %v1848_v3 = vpop.f32.mrf.mxu0 }
 0x2c4   :  { %v1921_v30 = vmax.f32 %v2996_v2, %v2999_v40  ;;  %v1893_v4 = vadd.f32 %v2948_v14, %v1865_v29  ;;  %v1866_v47 = vadd.f32 %v1848_v3, %v1672_v31  ;;  %2246 = vmatpush3.msra.mxu1 %v1968_v63  ;;  %v1908_v6 = vmax.f32 %v1892_v51, 0.0 }
 0x2c5   :  { %2247 = vmatprep.subr.mxu1 %v1983_v1 }
 0x2c6   :  { %v1894_v59 = vadd.f32 %v2952_v44, %v1866_v47  ;;  %2248 = vmatpush3.msra.mxu1 %v1967_v50  ;;  %v1909_v19 = vmax.f32 %v1893_v4, 0.0  ;;  %v1917_v14 = vmax.f32 %v1907_v45, %v1908_v6 }
 0x2c7   :  { %2249 = vmatprep.subr.mxu1 %v1982_v60 }
 0x2c8   :  { %v1910_v34 = vmax.f32 %v1894_v59, 0.0  ;;  %2250 = vmatpush3.msra.mxu1 %v1966_v5 }
 0x2c9   :  { %2251 = vmatprep.subr.mxu1 %v1981_v11 }
 0x2ca   :  { %v1918_v32 = vmax.f32 %v1909_v19, %v1910_v34  ;;  %2252 = vmatpush3.msra.mxu1 %v1965_v9 }
 0x2cb   :  { %2253 = vmatprep.subr.mxu1 %v1980_v57 }
 0x2cc   :  { %2254 = vmatpush3.msra.mxu1 %v1964_v17  ;;  %v1922_v44 = vmax.f32 %v1917_v14, %v1918_v32 }
 0x2cd   :  { %2255 = vmatprep.subr.mxu1 %v1979_v35 }
 0x2ce   :  { %2256 = vmatpush3.msra.mxu1 %v1963_v41  ;;  %2128 = vmatprep.mubr.f32.mxu1 %v1922_v44 }
 0x2cf   :  { %2257 = vmatprep.subr.mxu1 %v1978_v46 }
 0x2d0   :  { %2258 = vmatpush3.msra.mxu1 %v1962_v27 }
 0x2d1   :  { %2259 = vmatprep.subr.mxu1 %v1977_v7 }
 0x2d2   :  { %2260 = vmatpush3.msra.mxu1 %v1961_v52 }
 0x2d3   :  { %2261 = vmatprep.subr.mxu1 %v1976_v13 }
 0x2d4   :  { %2262 = vmatpush3.msra.mxu1 %v1960_v0 }
 0x2d5   :  { %2263 = vmatprep.subr.mxu1 %v1975_v62 }
 0x2d6   :  { %2264 = vmatpush3.msra.mxu1 %v1959_v36 }
 0x2d7   :  { %2265 = vmatprep.subr.mxu1 %v1974_v42 }
 0x2d8   :  { %2266 = vmatpush3.msra.mxu1 %v1958_v15 }
 0x2d9   :  { %2267 = vmatprep.subr.mxu1 %v1973_v48 }
 0x2da   :  { %2268 = vmatpush3.msra.mxu1 %v1957_v54 }
 0x2db   :  { %2269 = vmatprep.subr.mxu1 %v1972_v21 }
 0x2dc   :  { %2270 = vmatpush3.msra.mxu1 %v1956_v55 }
 0x2dd   :  { %2271 = vmatprep.subr.mxu1 %v1971_v58 }
 0x2de   :  { %2272 = vmatpush3.msra.mxu1 %v1955_v22 }
 0x2df   :  { %2129 = vmatmul.mubr.f32.vlgmr.msra.gmra.mxu1 %v1921_v30 }
 0x37f   :  { %v2238_v56 = vpop.f32.mrf.mxu1 }
 0x381   :  { %v2239_v24 = vpop.f32.mrf.mxu1 }
 0x382   :  { %v2240_v28 = vadd.f32 %v2239_v24, %v2238_v56 }
 0x384   :  { %v2061_v8 = vadd.f32 %v2240_v28, %v2205_v39 }
 0x39f   :  { %v2273_v10 = vpop.f32.mrf.mxu1 }
 0x3a1   :  { %v2274_v26 = vpop.f32.mrf.mxu1 }
 0x3a2   :  { %v2275_v20 = vadd.f32 %v2274_v26, %v2273_v10 }
 0x3a4   :  { %v2131_v37 = vadd.f32 %v2275_v20, %v2061_v8 }
 0x3a6   :  { %2134 = vst [vmem:[#allocation14] sm:$0xff] %v2131_v37 }
 0x3a7   :  { %2441 = shalt.err (!%p2438_p11)
}
 0x3a8   :  { %2144 = dma.vmem_to_hbm [thread:$0]  %s2142_s6, 128, %s3020_s7, [#allocation4]  }
 0x3a9   :  { %2458 = dma.done.wait [#allocation4], 128  }
 0x3aa   :  { %2459 = vsyncadd [#allocation4], 4294967168 }
 0x3ab   :  { %2148 = vsyncpa [#allocation3], 1 }
 0x3ac   :  { %2149 = vsyncpa [#allocation6], 1 }
 0x3ad   :  { %2150 = vsyncpa [#allocation9], 1 }
 0x3ae   :  { %2151 = vsyncpa [#allocation12], 1 }
 0x3af   :  { %2152 = vsyncpa [#allocation4], 1 }

</bundles_post_ra>
